<compile_context>
chip_gen: v5e
topology: v5e:2x2
jax: 0.10.0
libtpu: 0.0.40
codegen_flags: <defaults>
</compile_context>

<pallas_src>
import functools

import jax
import jax.numpy as jnp
from jax.experimental import pallas as pl
from jax.experimental.pallas import tpu as pltpu


def _round_up(x, m):
    return ((x + m - 1) // m) * m


def _sigmoid_via_tanh(x):
    # sigmoid(x) == 0.5 * tanh(0.5 * x) + 0.5 : a single EUP op per element.
    return 0.5 * jnp.tanh(0.5 * x) + 0.5


def _lstm_recurrent_kernel(gx_ref, whh_ref, out_ref, h_sc, c_sc, *, ts, hp):
    """One grid step == TS LSTM time steps for one batch chunk.

    gx_ref : (TS, BB, 4*Hp) bf16  precomputed x@W_ih + bias for these steps
    whh_ref: (Hp, 4*Hp)     f32   hidden->gates weight (gate order i,f,o,g)
    out_ref: (TS, BB, Hp)   bf16  hidden states written for these steps
    h_sc,c_sc: (BB, Hp) f32 VMEM scratch carried across the time grid axis
    """
    @pl.when(pl.program_id(1) == 0)
    def _():
        h_sc[...] = jnp.zeros_like(h_sc)
        c_sc[...] = jnp.zeros_like(c_sc)

    w_hh = whh_ref[...]  # loaded once per grid step, reused by all TS steps

    def step(s, carry):
        h_prev, c_prev = carry
        gates = gx_ref[s].astype(jnp.float32) + jnp.dot(
            h_prev, w_hh, preferred_element_type=jnp.float32)  # (BB, 4*Hp) f32
        sig = _sigmoid_via_tanh(gates[:, :3 * hp])              # i, f, o contiguous
        i_g = sig[:, 0 * hp:1 * hp]
        f_g = sig[:, 1 * hp:2 * hp]
        o_g = sig[:, 2 * hp:3 * hp]
        g_g = jnp.tanh(gates[:, 3 * hp:4 * hp])
        c_new = f_g * c_prev + i_g * g_g
        h_new = o_g * jnp.tanh(c_new)
        out_ref[s] = h_new.astype(out_ref.dtype)                # full (8,128) tiles
        return h_new, c_new

    h_fin, c_fin = jax.lax.fori_loop(
        0, ts, step, (h_sc[...], c_sc[...]), unroll=True)
    h_sc[...] = h_fin
    c_sc[...] = c_fin


def _run_recurrence(gx, w_hh, *, ts, bb):
    """gx: (Tp, Bp, 4*Hp) bf16, w_hh: (Hp, 4*Hp) f32 -> (Tp, Bp, Hp) bf16."""
    tp, bp, g4 = gx.shape
    hp = g4 // 4
    n_t = tp // ts
    n_b = bp // bb

    # Explicit VMEM budget: double-buffered bf16 gx/out tiles, resident W_hh,
    # h/c scratch.  Capped at 48 MiB so there is headroom under v7x's 64 MiB
    # physical VMEM (v5e/v6e have 128 MiB and never need more at these sizes).
    vmem_need = (2 * ts * bb * g4 * 2      # double-buffered gx tiles (bf16)
                 + 2 * ts * bb * hp * 2    # double-buffered out tiles (bf16)
                 + 2 * hp * g4 * 4         # W_hh (f32), conservatively x2
                 + 2 * bb * hp * 4)        # h/c scratch (f32)
    vmem_limit = int(min(max(int(vmem_need * 1.5) + (2 << 20), 16 << 20),
                         48 << 20))

    kernel = functools.partial(_lstm_recurrent_kernel, ts=ts, hp=hp)
    return pl.pallas_call(
        kernel,
        out_shape=jax.ShapeDtypeStruct((tp, bp, hp), jnp.bfloat16),
        grid_spec=pltpu.PrefetchScalarGridSpec(
            num_scalar_prefetch=0,
            grid=(n_b, n_t),
            in_specs=[
                pl.BlockSpec((ts, bb, g4), lambda b, t: (t, b, 0)),
                # W_hh index_map is constant; default double-buffering is a
                # small, acceptable waste at these sizes.
                pl.BlockSpec((hp, g4), lambda b, t: (0, 0)),
            ],
            out_specs=pl.BlockSpec((ts, bb, hp), lambda b, t: (t, b, 0)),
            scratch_shapes=[
                pltpu.VMEM((bb, hp), jnp.float32),
                pltpu.VMEM((bb, hp), jnp.float32),
            ],
        ),
        compiler_params=pltpu.CompilerParams(
            dimension_semantics=("parallel", "arbitrary"),  # batch | time
            vmem_limit_bytes=vmem_limit,
        ),
    )(gx, w_hh)


def _pack_gate_cols(w, h, hp):
    """(..., 4h) in torch gate order (i,f,g,o) -> (..., 4hp) in kernel order
    (i,f,o,g), each gate zero-padded from h to hp columns."""
    i, f, g, o = jnp.split(w, 4, axis=-1)
    pad = [(0, 0)] * (w.ndim - 1) + [(0, hp - h)]
    return jnp.concatenate([jnp.pad(p, pad) for p in (i, f, o, g)], axis=-1)


class RnnPallas:
    """Pallas equivalent of the PyTorch `Rnn` module's forward pass."""

    def __init__(self, in_dim, hidden_dim, n_layer, n_class, key, *,
                 time_block=32):
        self.in_dim = in_dim
        self.hidden_dim = hidden_dim
        self.n_layer = n_layer
        self.n_class = n_class
        self.time_block = time_block
        hp = _round_up(hidden_dim, 128)
        self.h_pad = hp

        k = 1.0 / jnp.sqrt(hidden_dim)
        self.params = []   # canonical torch-layout f32 params (for the reference)
        self.packed = []   # kernel-layout params (reordered, padded)
        for layer in range(n_layer):
            d_in = in_dim if layer == 0 else hidden_dim
            key, k1, k2, k3, k4 = jax.random.split(key, 5)
            # torch stores W_ih as (4H, d_in); we keep the transposed (d_in, 4H)
            w_ih = jax.random.uniform(k1, (d_in, 4 * hidden_dim), jnp.float32, -k, k)
            w_hh = jax.random.uniform(k2, (hidden_dim, 4 * hidden_dim), jnp.float32, -k, k)
            b_ih = jax.random.uniform(k3, (4 * hidden_dim,), jnp.float32, -k, k)
            b_hh = jax.random.uniform(k4, (4 * hidden_dim,), jnp.float32, -k, k)
            bias = b_ih + b_hh
            self.params.append((w_ih, w_hh, bias))

            w_ih_p = _pack_gate_cols(w_ih, hidden_dim, hp)
            if layer > 0:
                # layers > 0 consume the padded (.., Hp) hidden state; padded
                # hidden units are identically zero, so zero rows are exact.
                w_ih_p = jnp.pad(w_ih_p, ((0, hp - hidden_dim), (0, 0)))
            w_hh_p = jnp.pad(_pack_gate_cols(w_hh, hidden_dim, hp),
                             ((0, hp - hidden_dim), (0, 0)))
            bias_p = _pack_gate_cols(bias, hidden_dim, hp)
            self.packed.append((w_ih_p.astype(jnp.float32),
                                w_hh_p.astype(jnp.float32),
                                bias_p.astype(jnp.float32)))

        # classifier (nn.Linear) exists in __init__ but is unused in forward()
        key, kc = jax.random.split(key)
        self.classifier_w = jax.random.uniform(
            kc, (hidden_dim, n_class), jnp.float32, -k, k)

    def __call__(self, x_btd):
        # x_btd: (B, T, in_dim), batch_first like nn.LSTM(batch_first=True)
        b, t, _ = x_btd.shape
        ts = min(self.time_block, t)
        tp = _round_up(t, ts)

        bp = _round_up(b, 8)
        if bp > 128:                 # chunk the batch over the parallel grid axis
            bb = 128
            bp = _round_up(b, bb)
        elif bp >= 16:               # >=2 chunks so both v7x TensorCores work
            bb = _round_up((bp + 1) // 2, 8)
            bp = _round_up(bp, bb)
        else:
            bb = bp

        x_p = jnp.pad(x_btd.astype(jnp.float32),
                      ((0, bp - b), (0, tp - t), (0, 0)))

        h = None
        for layer, (w_ih_p, w_hh_p, bias_p) in enumerate(self.packed):
            if layer == 0:
                # batch-first -> time-major transpose folded into this matmul
                gx = jnp.einsum('btd,dg->tbg', x_p, w_ih_p,
                                preferred_element_type=jnp.float32) + bias_p
            else:
                gx = jnp.einsum('tbh,hg->tbg', h.astype(jnp.float32), w_ih_p,
                                preferred_element_type=jnp.float32) + bias_p
            gx = gx.astype(jnp.bfloat16)                     # dominant HBM stream
            h = _run_recurrence(gx, w_hh_p, ts=ts, bb=bb)    # (Tp, Bp, Hp) bf16

        out = h[:t, :b, :self.hidden_dim].astype(jnp.float32)
        return jnp.transpose(out, (1, 0, 2))   # (B, T, H), batch_first


def _reference_lstm(x_btd, params):
    """Pure-JAX reference (lax.scan) mirroring the kernel's precision choices
    (bf16 gx / hidden-state storage, f32 matmuls and cell state)."""
    h_seq = jnp.transpose(x_btd, (1, 0, 2)).astype(jnp.float32)  # (T, B, D)
    for (w_ih, w_hh, bias) in params:
        hdim = w_hh.shape[0]
        bsz = h_seq.shape[1]
        gx = (jnp.einsum('tbd,dg->tbg', h_seq, w_ih,
                         preferred_element_type=jnp.float32)
              + bias).astype(jnp.bfloat16)

        def step(carry, gx_t):
            h_prev, c_prev = carry
            gates = gx_t.astype(jnp.float32) + jnp.dot(
                h_prev, w_hh, preferred_element_type=jnp.float32)
            i = _sigmoid_via_tanh(gates[:, 0 * hdim:1 * hdim])
            f = _sigmoid_via_tanh(gates[:, 1 * hdim:2 * hdim])
            g = jnp.tanh(gates[:, 2 * hdim:3 * hdim])
            o = _sigmoid_via_tanh(gates[:, 3 * hdim:4 * hdim])
            c = f * c_prev + i * g
            hn = o * jnp.tanh(c)
            return (hn, c), hn.astype(jnp.bfloat16)

        init = (jnp.zeros((bsz, hdim), jnp.float32),
                jnp.zeros((bsz, hdim), jnp.float32))
        _, h_bf = jax.lax.scan(step, init, gx)
        h_seq = h_bf.astype(jnp.float32)
    return jnp.transpose(h_seq, (1, 0, 2))


if __name__ == "__main__":
    # Small shapes consistent with the module: x -> (batch, seq, in_dim)
    batch, seq, in_dim, hidden_dim, n_layer, n_class = 2, 8, 16, 32, 2, 4

    key = jax.random.PRNGKey(0)
    key_x, key_p = jax.random.split(key)
    x = jax.random.normal(key_x, (batch, seq, in_dim), dtype=jnp.float32)

    model = RnnPallas(in_dim, hidden_dim, n_layer, n_class, key_p)
    out = jax.block_until_ready(model(x))

    ref = _reference_lstm(x, model.params)
    assert out.shape == (batch, seq, hidden_dim), out.shape
    max_err = float(jnp.max(jnp.abs(out - ref)))
    assert jnp.allclose(out, ref, atol=5e-3, rtol=5e-3), f"max_err={max_err}"

    print("KERNEL_OK")
</pallas_src>

<mosaic_0001>
module attributes {stable_mosaic.version = 11 : i64} {
  func.func @_lstm_recurrent_kernel(%arg0: i32, %arg1: i32, %arg2: memref<8x8x512xbf16, #tpu.memory_space<vmem>>, %arg3: memref<128x512xf32, #tpu.memory_space<vmem>>, %arg4: memref<8x8x128xbf16, #tpu.memory_space<vmem>>, %arg5: memref<8x128xf32, #tpu.memory_space<vmem>>, %arg6: memref<8x128xf32, #tpu.memory_space<vmem>>) attributes {dimension_semantics = [#tpu.dimension_semantics<parallel>, #tpu.dimension_semantics<arbitrary>], iteration_bounds = array<i64: 1, 1>, scalar_prefetch = 0 : i64, scratch_operands = 2 : i64, tpu.core_type = #tpu.core_type<tc>, window_params = [{transform_indices = @transform_0, window_bounds = array<i64: 8, 8, 512>}, {pipeline_mode = #tpu.pipeline_mode<synchronous>, transform_indices = @transform_1, window_bounds = array<i64: 128, 512>}, {transform_indices = @transform_2, window_bounds = array<i64: 8, 8, 128>}]} {
    %c0_i32 = arith.constant 0 : i32
    %0 = arith.cmpi eq, %arg1, %c0_i32 : i32
    %1 = arith.extui %0 : i1 to i32
    %c0_i32_0 = arith.constant 0 : i32
    %2 = arith.cmpi ne, %1, %c0_i32_0 : i32
    scf.if %2 {
      %cst_74 = arith.constant 0.000000e+00 : f32
      %240 = vector.broadcast %cst_74 : f32 to vector<8x128xf32>
      %c0_75 = arith.constant 0 : index
      %c0_76 = arith.constant 0 : index
      %241 = vector.load %arg5[%c0_75, %c0_76] : memref<8x128xf32, #tpu.memory_space<vmem>>, vector<8x128xf32>
      tpu.vector_store %arg5[%c0_75, %c0_76], %240 {strides = array<i32>} : memref<8x128xf32, #tpu.memory_space<vmem>>, vector<8x128xf32>,
      %cst_77 = arith.constant 0.000000e+00 : f32
      %242 = vector.broadcast %cst_77 : f32 to vector<8x128xf32>
      %c0_78 = arith.constant 0 : index
      %c0_79 = arith.constant 0 : index
      %243 = vector.load %arg6[%c0_78, %c0_79] : memref<8x128xf32, #tpu.memory_space<vmem>>, vector<8x128xf32>
      tpu.vector_store %arg6[%c0_78, %c0_79], %242 {strides = array<i32>} : memref<8x128xf32, #tpu.memory_space<vmem>>, vector<8x128xf32>,
    } else {
    }
    %c0 = arith.constant 0 : index
    %c0_1 = arith.constant 0 : index
    %3 = vector.load %arg3[%c0, %c0_1] : memref<128x512xf32, #tpu.memory_space<vmem>>, vector<128x512xf32>
    %c0_2 = arith.constant 0 : index
    %c0_3 = arith.constant 0 : index
    %4 = vector.load %arg5[%c0_2, %c0_3] : memref<8x128xf32, #tpu.memory_space<vmem>>, vector<8x128xf32>
    %c0_4 = arith.constant 0 : index
    %c0_5 = arith.constant 0 : index
    %5 = vector.load %arg6[%c0_4, %c0_5] : memref<8x128xf32, #tpu.memory_space<vmem>>, vector<8x128xf32>
    %c0_i32_6 = arith.constant 0 : i32
    %6 = arith.index_cast %c0_i32_6 : i32 to index
    %c0_7 = arith.constant 0 : index
    %c0_8 = arith.constant 0 : index
    %7 = vector.load %arg2[%6, %c0_7, %c0_8] : memref<8x8x512xbf16, #tpu.memory_space<vmem>>, vector<1x8x512xbf16>
    %8 = vector.shape_cast %7 : vector<1x8x512xbf16> to vector<8x512xbf16>
    %9 = arith.extf %8 : vector<8x512xbf16> to vector<8x512xf32>
    %cst = arith.constant dense<0.000000e+00> : vector<8x512xf32>
    %10 = tpu.matmul %4, %3, %cst {dimension_numbers = #tpu.dot_dimension_numbers<[1], [0], [0], [1], [0, 0, 1, 1], [], []>} : vector<8x128xf32>, vector<128x512xf32>, vector<8x512xf32> -> vector<8x512xf32>
    %11 = arith.addf %9, %10 : vector<8x512xf32>
    %12 = vector.extract_strided_slice %11 {offsets = [0, 0], sizes = [8, 384], strides = [1, 1]} : vector<8x512xf32> to vector<8x384xf32>
    %cst_9 = arith.constant 5.000000e-01 : f32
    %13 = vector.broadcast %cst_9 : f32 to vector<8x384xf32>
    %14 = arith.mulf %13, %12 : vector<8x384xf32>
    %15 = math.tanh %14 : vector<8x384xf32>
    %cst_10 = arith.constant 5.000000e-01 : f32
    %16 = vector.broadcast %cst_10 : f32 to vector<8x384xf32>
    %17 = arith.mulf %16, %15 : vector<8x384xf32>
    %cst_11 = arith.constant 5.000000e-01 : f32
    %18 = vector.broadcast %cst_11 : f32 to vector<8x384xf32>
    %19 = arith.addf %17, %18 : vector<8x384xf32>
    %20 = vector.extract_strided_slice %19 {offsets = [0, 0], sizes = [8, 128], strides = [1, 1]} : vector<8x384xf32> to vector<8x128xf32>
    %21 = vector.extract_strided_slice %19 {offsets = [0, 128], sizes = [8, 128], strides = [1, 1]} : vector<8x384xf32> to vector<8x128xf32>
    %22 = vector.extract_strided_slice %19 {offsets = [0, 256], sizes = [8, 128], strides = [1, 1]} : vector<8x384xf32> to vector<8x128xf32>
    %23 = vector.extract_strided_slice %11 {offsets = [0, 384], sizes = [8, 128], strides = [1, 1]} : vector<8x512xf32> to vector<8x128xf32>
    %24 = math.tanh %23 : vector<8x128xf32>
    %25 = arith.mulf %21, %5 : vector<8x128xf32>
    %26 = arith.mulf %20, %24 : vector<8x128xf32>
    %27 = arith.addf %25, %26 : vector<8x128xf32>
    %28 = math.tanh %27 : vector<8x128xf32>
    %29 = arith.mulf %22, %28 : vector<8x128xf32>
    %30 = arith.truncf %29 : vector<8x128xf32> to vector<8x128xbf16>
    %31 = arith.index_cast %c0_i32_6 : i32 to index
    %c0_12 = arith.constant 0 : index
    %c0_13 = arith.constant 0 : index
    %32 = vector.load %arg4[%31, %c0_12, %c0_13] : memref<8x8x128xbf16, #tpu.memory_space<vmem>>, vector<1x8x128xbf16>
    %33 = vector.shape_cast %32 : vector<1x8x128xbf16> to vector<8x128xbf16>
    %34 = vector.shape_cast %30 : vector<8x128xbf16> to vector<1x8x128xbf16>
    tpu.vector_store %arg4[%31, %c0_12, %c0_13], %34 {strides = array<i32>} : memref<8x8x128xbf16, #tpu.memory_space<vmem>>, vector<1x8x128xbf16>,
    %c1_i32 = arith.constant 1 : i32
    %35 = arith.index_cast %c1_i32 : i32 to index
    %c0_14 = arith.constant 0 : index
    %c0_15 = arith.constant 0 : index
    %36 = vector.load %arg2[%35, %c0_14, %c0_15] : memref<8x8x512xbf16, #tpu.memory_space<vmem>>, vector<1x8x512xbf16>
    %37 = vector.shape_cast %36 : vector<1x8x512xbf16> to vector<8x512xbf16>
    %38 = arith.extf %37 : vector<8x512xbf16> to vector<8x512xf32>
    %cst_16 = arith.constant dense<0.000000e+00> : vector<8x512xf32>
    %39 = tpu.matmul %29, %3, %cst_16 {dimension_numbers = #tpu.dot_dimension_numbers<[1], [0], [0], [1], [0, 0, 1, 1], [], []>} : vector<8x128xf32>, vector<128x512xf32>, vector<8x512xf32> -> vector<8x512xf32>
    %40 = arith.addf %38, %39 : vector<8x512xf32>
    %41 = vector.extract_strided_slice %40 {offsets = [0, 0], sizes = [8, 384], strides = [1, 1]} : vector<8x512xf32> to vector<8x384xf32>
    %cst_17 = arith.constant 5.000000e-01 : f32
    %42 = vector.broadcast %cst_17 : f32 to vector<8x384xf32>
    %43 = arith.mulf %42, %41 : vector<8x384xf32>
    %44 = math.tanh %43 : vector<8x384xf32>
    %cst_18 = arith.constant 5.000000e-01 : f32
    %45 = vector.broadcast %cst_18 : f32 to vector<8x384xf32>
    %46 = arith.mulf %45, %44 : vector<8x384xf32>
    %cst_19 = arith.constant 5.000000e-01 : f32
    %47 = vector.broadcast %cst_19 : f32 to vector<8x384xf32>
    %48 = arith.addf %46, %47 : vector<8x384xf32>
    %49 = vector.extract_strided_slice %48 {offsets = [0, 0], sizes = [8, 128], strides = [1, 1]} : vector<8x384xf32> to vector<8x128xf32>
    %50 = vector.extract_strided_slice %48 {offsets = [0, 128], sizes = [8, 128], strides = [1, 1]} : vector<8x384xf32> to vector<8x128xf32>
    %51 = vector.extract_strided_slice %48 {offsets = [0, 256], sizes = [8, 128], strides = [1, 1]} : vector<8x384xf32> to vector<8x128xf32>
    %52 = vector.extract_strided_slice %40 {offsets = [0, 384], sizes = [8, 128], strides = [1, 1]} : vector<8x512xf32> to vector<8x128xf32>
    %53 = math.tanh %52 : vector<8x128xf32>
    %54 = arith.mulf %50, %27 : vector<8x128xf32>
    %55 = arith.mulf %49, %53 : vector<8x128xf32>
    %56 = arith.addf %54, %55 : vector<8x128xf32>
    %57 = math.tanh %56 : vector<8x128xf32>
    %58 = arith.mulf %51, %57 : vector<8x128xf32>
    %59 = arith.truncf %58 : vector<8x128xf32> to vector<8x128xbf16>
    %60 = arith.index_cast %c1_i32 : i32 to index
    %c0_20 = arith.constant 0 : index
    %c0_21 = arith.constant 0 : index
    %61 = vector.load %arg4[%60, %c0_20, %c0_21] : memref<8x8x128xbf16, #tpu.memory_space<vmem>>, vector<1x8x128xbf16>
    %62 = vector.shape_cast %61 : vector<1x8x128xbf16> to vector<8x128xbf16>
    %63 = vector.shape_cast %59 : vector<8x128xbf16> to vector<1x8x128xbf16>
    tpu.vector_store %arg4[%60, %c0_20, %c0_21], %63 {strides = array<i32>} : memref<8x8x128xbf16, #tpu.memory_space<vmem>>, vector<1x8x128xbf16>,
    %c2_i32 = arith.constant 2 : i32
    %64 = arith.index_cast %c2_i32 : i32 to index
    %c0_22 = arith.constant 0 : index
    %c0_23 = arith.constant 0 : index
    %65 = vector.load %arg2[%64, %c0_22, %c0_23] : memref<8x8x512xbf16, #tpu.memory_space<vmem>>, vector<1x8x512xbf16>
    %66 = vector.shape_cast %65 : vector<1x8x512xbf16> to vector<8x512xbf16>
    %67 = arith.extf %66 : vector<8x512xbf16> to vector<8x512xf32>
    %cst_24 = arith.constant dense<0.000000e+00> : vector<8x512xf32>
    %68 = tpu.matmul %58, %3, %cst_24 {dimension_numbers = #tpu.dot_dimension_numbers<[1], [0], [0], [1], [0, 0, 1, 1], [], []>} : vector<8x128xf32>, vector<128x512xf32>, vector<8x512xf32> -> vector<8x512xf32>
    %69 = arith.addf %67, %68 : vector<8x512xf32>
    %70 = vector.extract_strided_slice %69 {offsets = [0, 0], sizes = [8, 384], strides = [1, 1]} : vector<8x512xf32> to vector<8x384xf32>
    %cst_25 = arith.constant 5.000000e-01 : f32
    %71 = vector.broadcast %cst_25 : f32 to vector<8x384xf32>
    %72 = arith.mulf %71, %70 : vector<8x384xf32>
    %73 = math.tanh %72 : vector<8x384xf32>
    %cst_26 = arith.constant 5.000000e-01 : f32
    %74 = vector.broadcast %cst_26 : f32 to vector<8x384xf32>
    %75 = arith.mulf %74, %73 : vector<8x384xf32>
    %cst_27 = arith.constant 5.000000e-01 : f32
    %76 = vector.broadcast %cst_27 : f32 to vector<8x384xf32>
    %77 = arith.addf %75, %76 : vector<8x384xf32>
    %78 = vector.extract_strided_slice %77 {offsets = [0, 0], sizes = [8, 128], strides = [1, 1]} : vector<8x384xf32> to vector<8x128xf32>
    %79 = vector.extract_strided_slice %77 {offsets = [0, 128], sizes = [8, 128], strides = [1, 1]} : vector<8x384xf32> to vector<8x128xf32>
    %80 = vector.extract_strided_slice %77 {offsets = [0, 256], sizes = [8, 128], strides = [1, 1]} : vector<8x384xf32> to vector<8x128xf32>
    %81 = vector.extract_strided_slice %69 {offsets = [0, 384], sizes = [8, 128], strides = [1, 1]} : vector<8x512xf32> to vector<8x128xf32>
    %82 = math.tanh %81 : vector<8x128xf32>
    %83 = arith.mulf %79, %56 : vector<8x128xf32>
    %84 = arith.mulf %78, %82 : vector<8x128xf32>
    %85 = arith.addf %83, %84 : vector<8x128xf32>
    %86 = math.tanh %85 : vector<8x128xf32>
    %87 = arith.mulf %80, %86 : vector<8x128xf32>
    %88 = arith.truncf %87 : vector<8x128xf32> to vector<8x128xbf16>
    %89 = arith.index_cast %c2_i32 : i32 to index
    %c0_28 = arith.constant 0 : index
    %c0_29 = arith.constant 0 : index
    %90 = vector.load %arg4[%89, %c0_28, %c0_29] : memref<8x8x128xbf16, #tpu.memory_space<vmem>>, vector<1x8x128xbf16>
    %91 = vector.shape_cast %90 : vector<1x8x128xbf16> to vector<8x128xbf16>
    %92 = vector.shape_cast %88 : vector<8x128xbf16> to vector<1x8x128xbf16>
    tpu.vector_store %arg4[%89, %c0_28, %c0_29], %92 {strides = array<i32>} : memref<8x8x128xbf16, #tpu.memory_space<vmem>>, vector<1x8x128xbf16>,
    %c3_i32 = arith.constant 3 : i32
    %93 = arith.index_cast %c3_i32 : i32 to index
    %c0_30 = arith.constant 0 : index
    %c0_31 = arith.constant 0 : index
    %94 = vector.load %arg2[%93, %c0_30, %c0_31] : memref<8x8x512xbf16, #tpu.memory_space<vmem>>, vector<1x8x512xbf16>
    %95 = vector.shape_cast %94 : vector<1x8x512xbf16> to vector<8x512xbf16>
    %96 = arith.extf %95 : vector<8x512xbf16> to vector<8x512xf32>
    %cst_32 = arith.constant dense<0.000000e+00> : vector<8x512xf32>
    %97 = tpu.matmul %87, %3, %cst_32 {dimension_numbers = #tpu.dot_dimension_numbers<[1], [0], [0], [1], [0, 0, 1, 1], [], []>} : vector<8x128xf32>, vector<128x512xf32>, vector<8x512xf32> -> vector<8x512xf32>
    %98 = arith.addf %96, %97 : vector<8x512xf32>
    %99 = vector.extract_strided_slice %98 {offsets = [0, 0], sizes = [8, 384], strides = [1, 1]} : vector<8x512xf32> to vector<8x384xf32>
    %cst_33 = arith.constant 5.000000e-01 : f32
    %100 = vector.broadcast %cst_33 : f32 to vector<8x384xf32>
    %101 = arith.mulf %100, %99 : vector<8x384xf32>
    %102 = math.tanh %101 : vector<8x384xf32>
    %cst_34 = arith.constant 5.000000e-01 : f32
    %103 = vector.broadcast %cst_34 : f32 to vector<8x384xf32>
    %104 = arith.mulf %103, %102 : vector<8x384xf32>
    %cst_35 = arith.constant 5.000000e-01 : f32
    %105 = vector.broadcast %cst_35 : f32 to vector<8x384xf32>
    %106 = arith.addf %104, %105 : vector<8x384xf32>
    %107 = vector.extract_strided_slice %106 {offsets = [0, 0], sizes = [8, 128], strides = [1, 1]} : vector<8x384xf32> to vector<8x128xf32>
    %108 = vector.extract_strided_slice %106 {offsets = [0, 128], sizes = [8, 128], strides = [1, 1]} : vector<8x384xf32> to vector<8x128xf32>
    %109 = vector.extract_strided_slice %106 {offsets = [0, 256], sizes = [8, 128], strides = [1, 1]} : vector<8x384xf32> to vector<8x128xf32>
    %110 = vector.extract_strided_slice %98 {offsets = [0, 384], sizes = [8, 128], strides = [1, 1]} : vector<8x512xf32> to vector<8x128xf32>
    %111 = math.tanh %110 : vector<8x128xf32>
    %112 = arith.mulf %108, %85 : vector<8x128xf32>
    %113 = arith.mulf %107, %111 : vector<8x128xf32>
    %114 = arith.addf %112, %113 : vector<8x128xf32>
    %115 = math.tanh %114 : vector<8x128xf32>
    %116 = arith.mulf %109, %115 : vector<8x128xf32>
    %117 = arith.truncf %116 : vector<8x128xf32> to vector<8x128xbf16>
    %118 = arith.index_cast %c3_i32 : i32 to index
    %c0_36 = arith.constant 0 : index
    %c0_37 = arith.constant 0 : index
    %119 = vector.load %arg4[%118, %c0_36, %c0_37] : memref<8x8x128xbf16, #tpu.memory_space<vmem>>, vector<1x8x128xbf16>
    %120 = vector.shape_cast %119 : vector<1x8x128xbf16> to vector<8x128xbf16>
    %121 = vector.shape_cast %117 : vector<8x128xbf16> to vector<1x8x128xbf16>
    tpu.vector_store %arg4[%118, %c0_36, %c0_37], %121 {strides = array<i32>} : memref<8x8x128xbf16, #tpu.memory_space<vmem>>, vector<1x8x128xbf16>,
    %c4_i32 = arith.constant 4 : i32
    %122 = arith.index_cast %c4_i32 : i32 to index
    %c0_38 = arith.constant 0 : index
    %c0_39 = arith.constant 0 : index
    %123 = vector.load %arg2[%122, %c0_38, %c0_39] : memref<8x8x512xbf16, #tpu.memory_space<vmem>>, vector<1x8x512xbf16>
    %124 = vector.shape_cast %123 : vector<1x8x512xbf16> to vector<8x512xbf16>
    %125 = arith.extf %124 : vector<8x512xbf16> to vector<8x512xf32>
    %cst_40 = arith.constant dense<0.000000e+00> : vector<8x512xf32>
    %126 = tpu.matmul %116, %3, %cst_40 {dimension_numbers = #tpu.dot_dimension_numbers<[1], [0], [0], [1], [0, 0, 1, 1], [], []>} : vector<8x128xf32>, vector<128x512xf32>, vector<8x512xf32> -> vector<8x512xf32>
    %127 = arith.addf %125, %126 : vector<8x512xf32>
    %128 = vector.extract_strided_slice %127 {offsets = [0, 0], sizes = [8, 384], strides = [1, 1]} : vector<8x512xf32> to vector<8x384xf32>
    %cst_41 = arith.constant 5.000000e-01 : f32
    %129 = vector.broadcast %cst_41 : f32 to vector<8x384xf32>
    %130 = arith.mulf %129, %128 : vector<8x384xf32>
    %131 = math.tanh %130 : vector<8x384xf32>
    %cst_42 = arith.constant 5.000000e-01 : f32
    %132 = vector.broadcast %cst_42 : f32 to vector<8x384xf32>
    %133 = arith.mulf %132, %131 : vector<8x384xf32>
    %cst_43 = arith.constant 5.000000e-01 : f32
    %134 = vector.broadcast %cst_43 : f32 to vector<8x384xf32>
    %135 = arith.addf %133, %134 : vector<8x384xf32>
    %136 = vector.extract_strided_slice %135 {offsets = [0, 0], sizes = [8, 128], strides = [1, 1]} : vector<8x384xf32> to vector<8x128xf32>
    %137 = vector.extract_strided_slice %135 {offsets = [0, 128], sizes = [8, 128], strides = [1, 1]} : vector<8x384xf32> to vector<8x128xf32>
    %138 = vector.extract_strided_slice %135 {offsets = [0, 256], sizes = [8, 128], strides = [1, 1]} : vector<8x384xf32> to vector<8x128xf32>
    %139 = vector.extract_strided_slice %127 {offsets = [0, 384], sizes = [8, 128], strides = [1, 1]} : vector<8x512xf32> to vector<8x128xf32>
    %140 = math.tanh %139 : vector<8x128xf32>
    %141 = arith.mulf %137, %114 : vector<8x128xf32>
    %142 = arith.mulf %136, %140 : vector<8x128xf32>
    %143 = arith.addf %141, %142 : vector<8x128xf32>
    %144 = math.tanh %143 : vector<8x128xf32>
    %145 = arith.mulf %138, %144 : vector<8x128xf32>
    %146 = arith.truncf %145 : vector<8x128xf32> to vector<8x128xbf16>
    %147 = arith.index_cast %c4_i32 : i32 to index
    %c0_44 = arith.constant 0 : index
    %c0_45 = arith.constant 0 : index
    %148 = vector.load %arg4[%147, %c0_44, %c0_45] : memref<8x8x128xbf16, #tpu.memory_space<vmem>>, vector<1x8x128xbf16>
    %149 = vector.shape_cast %148 : vector<1x8x128xbf16> to vector<8x128xbf16>
    %150 = vector.shape_cast %146 : vector<8x128xbf16> to vector<1x8x128xbf16>
    tpu.vector_store %arg4[%147, %c0_44, %c0_45], %150 {strides = array<i32>} : memref<8x8x128xbf16, #tpu.memory_space<vmem>>, vector<1x8x128xbf16>,
    %c5_i32 = arith.constant 5 : i32
    %151 = arith.index_cast %c5_i32 : i32 to index
    %c0_46 = arith.constant 0 : index
    %c0_47 = arith.constant 0 : index
    %152 = vector.load %arg2[%151, %c0_46, %c0_47] : memref<8x8x512xbf16, #tpu.memory_space<vmem>>, vector<1x8x512xbf16>
    %153 = vector.shape_cast %152 : vector<1x8x512xbf16> to vector<8x512xbf16>
    %154 = arith.extf %153 : vector<8x512xbf16> to vector<8x512xf32>
    %cst_48 = arith.constant dense<0.000000e+00> : vector<8x512xf32>
    %155 = tpu.matmul %145, %3, %cst_48 {dimension_numbers = #tpu.dot_dimension_numbers<[1], [0], [0], [1], [0, 0, 1, 1], [], []>} : vector<8x128xf32>, vector<128x512xf32>, vector<8x512xf32> -> vector<8x512xf32>
    %156 = arith.addf %154, %155 : vector<8x512xf32>
    %157 = vector.extract_strided_slice %156 {offsets = [0, 0], sizes = [8, 384], strides = [1, 1]} : vector<8x512xf32> to vector<8x384xf32>
    %cst_49 = arith.constant 5.000000e-01 : f32
    %158 = vector.broadcast %cst_49 : f32 to vector<8x384xf32>
    %159 = arith.mulf %158, %157 : vector<8x384xf32>
    %160 = math.tanh %159 : vector<8x384xf32>
    %cst_50 = arith.constant 5.000000e-01 : f32
    %161 = vector.broadcast %cst_50 : f32 to vector<8x384xf32>
    %162 = arith.mulf %161, %160 : vector<8x384xf32>
    %cst_51 = arith.constant 5.000000e-01 : f32
    %163 = vector.broadcast %cst_51 : f32 to vector<8x384xf32>
    %164 = arith.addf %162, %163 : vector<8x384xf32>
    %165 = vector.extract_strided_slice %164 {offsets = [0, 0], sizes = [8, 128], strides = [1, 1]} : vector<8x384xf32> to vector<8x128xf32>
    %166 = vector.extract_strided_slice %164 {offsets = [0, 128], sizes = [8, 128], strides = [1, 1]} : vector<8x384xf32> to vector<8x128xf32>
    %167 = vector.extract_strided_slice %164 {offsets = [0, 256], sizes = [8, 128], strides = [1, 1]} : vector<8x384xf32> to vector<8x128xf32>
    %168 = vector.extract_strided_slice %156 {offsets = [0, 384], sizes = [8, 128], strides = [1, 1]} : vector<8x512xf32> to vector<8x128xf32>
    %169 = math.tanh %168 : vector<8x128xf32>
    %170 = arith.mulf %166, %143 : vector<8x128xf32>
    %171 = arith.mulf %165, %169 : vector<8x128xf32>
    %172 = arith.addf %170, %171 : vector<8x128xf32>
    %173 = math.tanh %172 : vector<8x128xf32>
    %174 = arith.mulf %167, %173 : vector<8x128xf32>
    %175 = arith.truncf %174 : vector<8x128xf32> to vector<8x128xbf16>
    %176 = arith.index_cast %c5_i32 : i32 to index
    %c0_52 = arith.constant 0 : index
    %c0_53 = arith.constant 0 : index
    %177 = vector.load %arg4[%176, %c0_52, %c0_53] : memref<8x8x128xbf16, #tpu.memory_space<vmem>>, vector<1x8x128xbf16>
    %178 = vector.shape_cast %177 : vector<1x8x128xbf16> to vector<8x128xbf16>
    %179 = vector.shape_cast %175 : vector<8x128xbf16> to vector<1x8x128xbf16>
    tpu.vector_store %arg4[%176, %c0_52, %c0_53], %179 {strides = array<i32>} : memref<8x8x128xbf16, #tpu.memory_space<vmem>>, vector<1x8x128xbf16>,
    %c6_i32 = arith.constant 6 : i32
    %180 = arith.index_cast %c6_i32 : i32 to index
    %c0_54 = arith.constant 0 : index
    %c0_55 = arith.constant 0 : index
    %181 = vector.load %arg2[%180, %c0_54, %c0_55] : memref<8x8x512xbf16, #tpu.memory_space<vmem>>, vector<1x8x512xbf16>
    %182 = vector.shape_cast %181 : vector<1x8x512xbf16> to vector<8x512xbf16>
    %183 = arith.extf %182 : vector<8x512xbf16> to vector<8x512xf32>
    %cst_56 = arith.constant dense<0.000000e+00> : vector<8x512xf32>
    %184 = tpu.matmul %174, %3, %cst_56 {dimension_numbers = #tpu.dot_dimension_numbers<[1], [0], [0], [1], [0, 0, 1, 1], [], []>} : vector<8x128xf32>, vector<128x512xf32>, vector<8x512xf32> -> vector<8x512xf32>
    %185 = arith.addf %183, %184 : vector<8x512xf32>
    %186 = vector.extract_strided_slice %185 {offsets = [0, 0], sizes = [8, 384], strides = [1, 1]} : vector<8x512xf32> to vector<8x384xf32>
    %cst_57 = arith.constant 5.000000e-01 : f32
    %187 = vector.broadcast %cst_57 : f32 to vector<8x384xf32>
    %188 = arith.mulf %187, %186 : vector<8x384xf32>
    %189 = math.tanh %188 : vector<8x384xf32>
    %cst_58 = arith.constant 5.000000e-01 : f32
    %190 = vector.broadcast %cst_58 : f32 to vector<8x384xf32>
    %191 = arith.mulf %190, %189 : vector<8x384xf32>
    %cst_59 = arith.constant 5.000000e-01 : f32
    %192 = vector.broadcast %cst_59 : f32 to vector<8x384xf32>
    %193 = arith.addf %191, %192 : vector<8x384xf32>
    %194 = vector.extract_strided_slice %193 {offsets = [0, 0], sizes = [8, 128], strides = [1, 1]} : vector<8x384xf32> to vector<8x128xf32>
    %195 = vector.extract_strided_slice %193 {offsets = [0, 128], sizes = [8, 128], strides = [1, 1]} : vector<8x384xf32> to vector<8x128xf32>
    %196 = vector.extract_strided_slice %193 {offsets = [0, 256], sizes = [8, 128], strides = [1, 1]} : vector<8x384xf32> to vector<8x128xf32>
    %197 = vector.extract_strided_slice %185 {offsets = [0, 384], sizes = [8, 128], strides = [1, 1]} : vector<8x512xf32> to vector<8x128xf32>
    %198 = math.tanh %197 : vector<8x128xf32>
    %199 = arith.mulf %195, %172 : vector<8x128xf32>
    %200 = arith.mulf %194, %198 : vector<8x128xf32>
    %201 = arith.addf %199, %200 : vector<8x128xf32>
    %202 = math.tanh %201 : vector<8x128xf32>
    %203 = arith.mulf %196, %202 : vector<8x128xf32>
    %204 = arith.truncf %203 : vector<8x128xf32> to vector<8x128xbf16>
    %205 = arith.index_cast %c6_i32 : i32 to index
    %c0_60 = arith.constant 0 : index
    %c0_61 = arith.constant 0 : index
    %206 = vector.load %arg4[%205, %c0_60, %c0_61] : memref<8x8x128xbf16, #tpu.memory_space<vmem>>, vector<1x8x128xbf16>
    %207 = vector.shape_cast %206 : vector<1x8x128xbf16> to vector<8x128xbf16>
    %208 = vector.shape_cast %204 : vector<8x128xbf16> to vector<1x8x128xbf16>
    tpu.vector_store %arg4[%205, %c0_60, %c0_61], %208 {strides = array<i32>} : memref<8x8x128xbf16, #tpu.memory_space<vmem>>, vector<1x8x128xbf16>,
    %c7_i32 = arith.constant 7 : i32
    %209 = arith.index_cast %c7_i32 : i32 to index
    %c0_62 = arith.constant 0 : index
    %c0_63 = arith.constant 0 : index
    %210 = vector.load %arg2[%209, %c0_62, %c0_63] : memref<8x8x512xbf16, #tpu.memory_space<vmem>>, vector<1x8x512xbf16>
    %211 = vector.shape_cast %210 : vector<1x8x512xbf16> to vector<8x512xbf16>
    %212 = arith.extf %211 : vector<8x512xbf16> to vector<8x512xf32>
    %cst_64 = arith.constant dense<0.000000e+00> : vector<8x512xf32>
    %213 = tpu.matmul %203, %3, %cst_64 {dimension_numbers = #tpu.dot_dimension_numbers<[1], [0], [0], [1], [0, 0, 1, 1], [], []>} : vector<8x128xf32>, vector<128x512xf32>, vector<8x512xf32> -> vector<8x512xf32>
    %214 = arith.addf %212, %213 : vector<8x512xf32>
    %215 = vector.extract_strided_slice %214 {offsets = [0, 0], sizes = [8, 384], strides = [1, 1]} : vector<8x512xf32> to vector<8x384xf32>
    %cst_65 = arith.constant 5.000000e-01 : f32
    %216 = vector.broadcast %cst_65 : f32 to vector<8x384xf32>
    %217 = arith.mulf %216, %215 : vector<8x384xf32>
    %218 = math.tanh %217 : vector<8x384xf32>
    %cst_66 = arith.constant 5.000000e-01 : f32
    %219 = vector.broadcast %cst_66 : f32 to vector<8x384xf32>
    %220 = arith.mulf %219, %218 : vector<8x384xf32>
    %cst_67 = arith.constant 5.000000e-01 : f32
    %221 = vector.broadcast %cst_67 : f32 to vector<8x384xf32>
    %222 = arith.addf %220, %221 : vector<8x384xf32>
    %223 = vector.extract_strided_slice %222 {offsets = [0, 0], sizes = [8, 128], strides = [1, 1]} : vector<8x384xf32> to vector<8x128xf32>
    %224 = vector.extract_strided_slice %222 {offsets = [0, 128], sizes = [8, 128], strides = [1, 1]} : vector<8x384xf32> to vector<8x128xf32>
    %225 = vector.extract_strided_slice %222 {offsets = [0, 256], sizes = [8, 128], strides = [1, 1]} : vector<8x384xf32> to vector<8x128xf32>
    %226 = vector.extract_strided_slice %214 {offsets = [0, 384], sizes = [8, 128], strides = [1, 1]} : vector<8x512xf32> to vector<8x128xf32>
    %227 = math.tanh %226 : vector<8x128xf32>
    %228 = arith.mulf %224, %201 : vector<8x128xf32>
    %229 = arith.mulf %223, %227 : vector<8x128xf32>
    %230 = arith.addf %228, %229 : vector<8x128xf32>
    %231 = math.tanh %230 : vector<8x128xf32>
    %232 = arith.mulf %225, %231 : vector<8x128xf32>
    %233 = arith.truncf %232 : vector<8x128xf32> to vector<8x128xbf16>
    %234 = arith.index_cast %c7_i32 : i32 to index
    %c0_68 = arith.constant 0 : index
    %c0_69 = arith.constant 0 : index
    %235 = vector.load %arg4[%234, %c0_68, %c0_69] : memref<8x8x128xbf16, #tpu.memory_space<vmem>>, vector<1x8x128xbf16>
    %236 = vector.shape_cast %235 : vector<1x8x128xbf16> to vector<8x128xbf16>
    %237 = vector.shape_cast %233 : vector<8x128xbf16> to vector<1x8x128xbf16>
    tpu.vector_store %arg4[%234, %c0_68, %c0_69], %237 {strides = array<i32>} : memref<8x8x128xbf16, #tpu.memory_space<vmem>>, vector<1x8x128xbf16>,
    %c8_i32 = arith.constant 8 : i32
    %c0_70 = arith.constant 0 : index
    %c0_71 = arith.constant 0 : index
    %238 = vector.load %arg5[%c0_70, %c0_71] : memref<8x128xf32, #tpu.memory_space<vmem>>, vector<8x128xf32>
    tpu.vector_store %arg5[%c0_70, %c0_71], %232 {strides = array<i32>} : memref<8x128xf32, #tpu.memory_space<vmem>>, vector<8x128xf32>,
    %c0_72 = arith.constant 0 : index
    %c0_73 = arith.constant 0 : index
    %239 = vector.load %arg6[%c0_72, %c0_73] : memref<8x128xf32, #tpu.memory_space<vmem>>, vector<8x128xf32>
    tpu.vector_store %arg6[%c0_72, %c0_73], %230 {strides = array<i32>} : memref<8x128xf32, #tpu.memory_space<vmem>>, vector<8x128xf32>,
    return
  }
  func.func @transform_0(%arg0: i32, %arg1: i32) -> (i32, i32, i32) {
    %c0_i32 = arith.constant 0 : i32
    %c0_i32_0 = arith.constant 0 : i32
    return %arg1, %arg0, %c0_i32 : i32, i32, i32
  }
  func.func @transform_1(%arg0: i32, %arg1: i32) -> (i32, i32) {
    %c0_i32 = arith.constant 0 : i32
    %c0_i32_0 = arith.constant 0 : i32
    %c0_i32_1 = arith.constant 0 : i32
    return %c0_i32, %c0_i32_0 : i32, i32
  }
  func.func @transform_2(%arg0: i32, %arg1: i32) -> (i32, i32, i32) {
    %c0_i32 = arith.constant 0 : i32
    %c0_i32_0 = arith.constant 0 : i32
    return %arg1, %arg0, %c0_i32 : i32, i32, i32
  }
}

</mosaic_0001>

<bundles_post_ra>
// kernel: tpu_custom_call.1
= control target key start
LH: loop header
LB: loop body
LE: loop exit
PB: predicated region body
PF: predicated region fallthrough
CT: control target
= control target key end

     0   :  { %7 = vsyncpa [#allocation5], 0  ;;  %s2086_s0 = inlined_call_operand.hbm [shape: bf16[8,8,512], index: 0, kind: input, shape index: {}]   ;;  %s2087_s1 = inlined_call_operand.hbm [shape: f32[128,512], index: 1, kind: input, shape index: {}]   ;;  %s2088_s2 = inlined_call_operand.hbm [shape: bf16[8,8,128], index: 2, kind: output, shape index: {}]  }
   0x1   :  { %8 = vsyncpa [#allocation8], 0 }
   0x2   :  { %9 = vsyncpa [#allocation6], 0  ;;  %s14_s11 = sshll.u32 %s2086_s0, 4  ;;  %s1264_s12 = smov [#allocation4]   ;;  %s15_s11 = int_to_ptr.hbm [resolvable:$true] %s14_s11 }
   0x3   :  { %s16_s13 = sshll.u32 %s1264_s12, 4  ;;  %s27_s16 = sshll.u32 %s2087_s1, 4  ;;  %s17_s13 = int_to_ptr.vmem [resolvable:$true] %s16_s13  ;;  %s28_s16 = int_to_ptr.hbm [resolvable:$true] %s27_s16 }
   0x4   :  { %s1265_s17 = smov 256   ;;  %s1266_s18 = smov 16  }
   0x5   :  { %22 = dma.hbm_to_vmem [thread:$0]  %s15_s11, 2048, %s17_s13, [#allocation5], %s1265_s17, %s1265_s17, %s1266_s18  }
   0x6   :  { %s1267_s19 = smov [#allocation7]   ;;  %s1268_s21 = smov 512  }
   0x7   :  { %s29_s20 = sshll.u32 %s1267_s19, 4  ;;  %s1269_s22 = smov 32   ;;  %s30_s20 = int_to_ptr.vmem [resolvable:$true] %s29_s20 }
   0x8   :  { %35 = dma.hbm_to_vmem [thread:$0]  %s28_s16, 8192, %s30_s20, [#allocation8], %s1268_s21, %s1268_s21, %s1269_s22  }
   0x9   :  { %1258 = dma.done.wait [#allocation5], 2048  }
   0xa   :  { %1259 = vsyncadd [#allocation5], 4294965248 }
   0xb   :  { %1260 = dma.done.wait [#allocation8], 8192  }
   0xc   :  { %1261 = vsyncadd [#allocation8], 4294959104  ;;  %v1295_v0 = vld [vmem:[#allocation7 + $0x1e0] sm:$0xff]  ;;  %v1297_v1 = vld [vmem:[#allocation7 + $0x1e8] sm:$0xff]  ;;  %v1270_v63 = vmov 0.0   ;;  %s1271_s0 = smov [#allocation9]  }
   0xd   :  { %v1299_v2 = vld [vmem:[#allocation7 + $0x1f8] sm:$0xff]  ;;  %122 = vmatpush.msra.mxu0 %v1295_v0  ;;  %142 = vmatpush.msra.mxu1 %v1297_v1  ;;  %v1303_v3 = vld [vmem:[#allocation7 + $0x1c0] sm:$0xff]  ;;  %v1305_v4 = vld [vmem:[#allocation7 + $0x1c8] sm:$0xff]  ;;  %s1016_s1 = sshll.u32 %s1271_s0, 4  ;;  %s1018_s25 = sshll.u32 %s2088_s2, 4  ;;  %s1017_s1 = int_to_ptr.vmem [resolvable:$true] %s1016_s1  ;;  %s1019_s25 = int_to_ptr.hbm [resolvable:$true] %s1018_s25 }
   0xe   :  { %v1307_v5 = vld [vmem:[#allocation7 + $0x1d8] sm:$0xff]  ;;  %182 = vmatpush.msra.mxu3 %v1299_v2  ;;  %v1310_v6 = vld [vmem:[#allocation7 + $0x1a0] sm:$0xff]  ;;  %v1312_v7 = vld [vmem:[#allocation7 + $0x1a8] sm:$0xff]  ;;  %s1272_s26 = smov 64   ;;  %s1273_s27 = smov 4  }
   0xf   :  { %123 = vmatpush.msra.mxu0 %v1303_v3  ;;  %143 = vmatpush.msra.mxu1 %v1305_v4  ;;  %v1316_v8 = vld [vmem:[#allocation7 + $0x1b8] sm:$0xff]  ;;  %v1318_v9 = vld [vmem:[#allocation7 + $0x1f0] sm:$0xff]  ;;  %v1322_v10 = vld [vmem:[#allocation7 + $0x180] sm:$0xff] }
  0x10   :  { %183 = vmatpush.msra.mxu3 %v1307_v5  ;;  %162 = vmatpush.msra.mxu2 %v1318_v9  ;;  %v1324_v11 = vld [vmem:[#allocation7 + $0x188] sm:$0xff]  ;;  %v1326_v12 = vld [vmem:[#allocation7 + $0x1d0] sm:$0xff]  ;;  %v1330_v13 = vld [vmem:[#allocation7 + $0x198] sm:$0xff] }
  0x11   :  { %124 = vmatpush.msra.mxu0 %v1310_v6  ;;  %144 = vmatpush.msra.mxu1 %v1312_v7  ;;  %v1332_v14 = vld [vmem:[#allocation7 + $0x1b0] sm:$0xff]  ;;  %v1336_v15 = vld [vmem:[#allocation7 + $0x160] sm:$0xff]  ;;  %v1338_v16 = vld [vmem:[#allocation7 + $0x168] sm:$0xff] }
  0x12   :  { %184 = vmatpush.msra.mxu3 %v1316_v8  ;;  %163 = vmatpush.msra.mxu2 %v1326_v12  ;;  %v1342_v17 = vld [vmem:[#allocation7 + $0x178] sm:$0xff]  ;;  %v1344_v18 = vld [vmem:[#allocation7 + $0x190] sm:$0xff]  ;;  %v1348_v19 = vld [vmem:[#allocation7 + $0x140] sm:$0xff] }
  0x13   :  { %125 = vmatpush.msra.mxu0 %v1322_v10  ;;  %145 = vmatpush.msra.mxu1 %v1324_v11  ;;  %v1350_v20 = vld [vmem:[#allocation7 + $0x148] sm:$0xff]  ;;  %v1354_v21 = vld [vmem:[#allocation7 + $0x158] sm:$0xff]  ;;  %v1356_v22 = vld [vmem:[#allocation7 + $0x170] sm:$0xff] }
  0x14   :  { %185 = vmatpush.msra.mxu3 %v1330_v13  ;;  %164 = vmatpush.msra.mxu2 %v1332_v14  ;;  %v1360_v23 = vld [vmem:[#allocation7 + $0x120] sm:$0xff]  ;;  %v1362_v24 = vld [vmem:[#allocation7 + $0x128] sm:$0xff]  ;;  %v1366_v25 = vld [vmem:[#allocation7 + $0x138] sm:$0xff] }
  0x15   :  { %126 = vmatpush.msra.mxu0 %v1336_v15  ;;  %146 = vmatpush.msra.mxu1 %v1338_v16  ;;  %v1368_v26 = vld [vmem:[#allocation7 + $0x150] sm:$0xff]  ;;  %v1372_v27 = vld [vmem:[#allocation7 + $0x100] sm:$0xff]  ;;  %v1374_v28 = vld [vmem:[#allocation7 + $0x108] sm:$0xff] }
  0x16   :  { %186 = vmatpush.msra.mxu3 %v1342_v17  ;;  %165 = vmatpush.msra.mxu2 %v1344_v18  ;;  %v1378_v29 = vld [vmem:[#allocation7 + $0x118] sm:$0xff]  ;;  %v1380_v30 = vld [vmem:[#allocation7 + $0x130] sm:$0xff]  ;;  %v1384_v31 = vld [vmem:[#allocation7 + $0xe0] sm:$0xff] }
  0x17   :  { %127 = vmatpush.msra.mxu0 %v1348_v19  ;;  %147 = vmatpush.msra.mxu1 %v1350_v20  ;;  %v1386_v32 = vld [vmem:[#allocation7 + $0xe8] sm:$0xff]  ;;  %v1390_v33 = vld [vmem:[#allocation7 + $0xf8] sm:$0xff]  ;;  %v1392_v34 = vld [vmem:[#allocation7 + $0x110] sm:$0xff] }
  0x18   :  { %187 = vmatpush.msra.mxu3 %v1354_v21  ;;  %166 = vmatpush.msra.mxu2 %v1356_v22  ;;  %v1396_v35 = vld [vmem:[#allocation7 + $0xc0] sm:$0xff]  ;;  %v1398_v36 = vld [vmem:[#allocation7 + $0xc8] sm:$0xff]  ;;  %v1402_v37 = vld [vmem:[#allocation7 + $0xd8] sm:$0xff] }
  0x19   :  { %128 = vmatpush.msra.mxu0 %v1360_v23  ;;  %148 = vmatpush.msra.mxu1 %v1362_v24  ;;  %v1404_v38 = vld [vmem:[#allocation7 + $0xf0] sm:$0xff]  ;;  %v1408_v39 = vld [vmem:[#allocation7 + $0xa0] sm:$0xff]  ;;  %v1410_v40 = vld [vmem:[#allocation7 + $0xa8] sm:$0xff] }
  0x1a   :  { %188 = vmatpush.msra.mxu3 %v1366_v25  ;;  %167 = vmatpush.msra.mxu2 %v1368_v26  ;;  %v1414_v41 = vld [vmem:[#allocation7 + $0xb8] sm:$0xff]  ;;  %v1416_v42 = vld [vmem:[#allocation7 + $0xd0] sm:$0xff]  ;;  %v1420_v43 = vld [vmem:[#allocation7 + $0x80] sm:$0xff] }
  0x1b   :  { %129 = vmatpush.msra.mxu0 %v1372_v27  ;;  %149 = vmatpush.msra.mxu1 %v1374_v28  ;;  %2153 = vst [vmem:[#allocation13_spill] sm:$0xff] %v1414_v41  ;;  %v1422_v44 = vld [vmem:[#allocation7 + $0x88] sm:$0xff]  ;;  %v1426_v45 = vld [vmem:[#allocation7 + $0x98] sm:$0xff]  ;;  %v1428_v46 = vld [vmem:[#allocation7 + $0xb0] sm:$0xff] }
  0x1c   :  { %189 = vmatpush.msra.mxu3 %v1378_v29  ;;  %168 = vmatpush.msra.mxu2 %v1380_v30  ;;  %2154 = vst [vmem:[#allocation14_spill] sm:$0xff] %v1420_v43  ;;  %v1432_v47 = vld [vmem:[#allocation7 + $0x60] sm:$0xff]  ;;  %v1434_v48 = vld [vmem:[#allocation7 + $0x68] sm:$0xff]  ;;  %v1438_v49 = vld [vmem:[#allocation7 + $0x78] sm:$0xff] }
  0x1d   :  { %130 = vmatpush.msra.mxu0 %v1384_v31  ;;  %150 = vmatpush.msra.mxu1 %v1386_v32  ;;  %2155 = vst [vmem:[#allocation15_spill] sm:$0xff] %v1422_v44  ;;  %v1440_v50 = vld [vmem:[#allocation7 + $0x90] sm:$0xff]  ;;  %v1444_v51 = vld [vmem:[#allocation7 + $0x40] sm:$0xff]  ;;  %v1446_v52 = vld [vmem:[#allocation7 + $0x48] sm:$0xff] }
  0x1e   :  { %190 = vmatpush.msra.mxu3 %v1390_v33  ;;  %169 = vmatpush.msra.mxu2 %v1392_v34  ;;  %2156 = vst [vmem:[#allocation16_spill] sm:$0xff] %v1426_v45  ;;  %v1450_v53 = vld [vmem:[#allocation7 + $0x58] sm:$0xff]  ;;  %v1452_v54 = vld [vmem:[#allocation7 + $0x70] sm:$0xff]  ;;  %v1456_v55 = vld [vmem:[#allocation7 + $0x20] sm:$0xff] }
  0x1f   :  { %131 = vmatpush.msra.mxu0 %v1396_v35  ;;  %151 = vmatpush.msra.mxu1 %v1398_v36  ;;  %2157 = vst [vmem:[#allocation17_spill] sm:$0xff] %v1432_v47  ;;  %v1458_v56 = vld [vmem:[#allocation7 + $0x28] sm:$0xff]  ;;  %v1462_v57 = vld [vmem:[#allocation7 + $0x38] sm:$0xff]  ;;  %v1464_v58 = vld [vmem:[#allocation7 + $0x50] sm:$0xff] }
  0x20   :  { %191 = vmatpush.msra.mxu3 %v1402_v37  ;;  %170 = vmatpush.msra.mxu2 %v1404_v38  ;;  %2158 = vst [vmem:[#allocation18_spill] sm:$0xff] %v1434_v48  ;;  %v1468_v59 = vld [vmem:[#allocation7] sm:$0xff]  ;;  %v1470_v60 = vld [vmem:[#allocation7 + $0x8] sm:$0xff]  ;;  %v1474_v61 = vld [vmem:[#allocation7 + $0x18] sm:$0xff] }
  0x21   :  { %132 = vmatpush.msra.mxu0 %v1408_v39  ;;  %152 = vmatpush.msra.mxu1 %v1410_v40  ;;  %2159 = vst [vmem:[#allocation19_spill] sm:$0xff] %v1438_v49  ;;  %v1480_v62 = vld [vmem:[#allocation7 + $0x30] sm:$0xff] }
  0x22   :  { %192 = vmatpush.msra.mxu3 %v1414_v41  ;;  %171 = vmatpush.msra.mxu2 %v1416_v42  ;;  %2160 = vst [vmem:[#allocation20_spill] sm:$0xff] %v1440_v50 }
  0x23   :  { %133 = vmatpush.msra.mxu0 %v1420_v43  ;;  %153 = vmatpush.msra.mxu1 %v1422_v44  ;;  %2161 = vst [vmem:[#allocation21_spill] sm:$0xff] %v1444_v51 }
  0x24   :  { %193 = vmatpush.msra.mxu3 %v1426_v45  ;;  %172 = vmatpush.msra.mxu2 %v1428_v46  ;;  %2162 = vst [vmem:[#allocation22_spill] sm:$0xff] %v1446_v52 }
  0x25   :  { %134 = vmatpush.msra.mxu0 %v1432_v47  ;;  %154 = vmatpush.msra.mxu1 %v1434_v48  ;;  %2163 = vst [vmem:[#allocation23_spill] sm:$0xff] %v1450_v53 }
  0x26   :  { %2164 = vst [vmem:[#allocation24_spill] sm:$0xff] %v1452_v54  ;;  %194 = vmatpush.msra.mxu3 %v1438_v49  ;;  %173 = vmatpush.msra.mxu2 %v1440_v50 }
  0x27   :  { %2165 = vst [vmem:[#allocation25_spill] sm:$0xff] %v1456_v55  ;;  %135 = vmatpush.msra.mxu0 %v1444_v51  ;;  %155 = vmatpush.msra.mxu1 %v1446_v52 }
  0x28   :  { %2166 = vst [vmem:[#allocation26_spill] sm:$0xff] %v1458_v56  ;;  %195 = vmatpush.msra.mxu3 %v1450_v53  ;;  %174 = vmatpush.msra.mxu2 %v1452_v54 }
  0x29   :  { %2167 = vst [vmem:[#allocation27_spill] sm:$0xff] %v1462_v57  ;;  %136 = vmatpush.msra.mxu0 %v1456_v55  ;;  %156 = vmatpush.msra.mxu1 %v1458_v56  ;;  %v1483_v55 = vld [vmem:[#allocation7 + $0x10] sm:$0xff] }
  0x2a   :  { %2168 = vst [vmem:[#allocation28_spill] sm:$0xff] %v1464_v58  ;;  %196 = vmatpush.msra.mxu3 %v1462_v57  ;;  %175 = vmatpush.msra.mxu2 %v1464_v58 }
  0x2b   :  { %2169 = vst [vmem:[#allocation29_spill] sm:$0xff] %v1468_v59  ;;  %137 = vmatpush.msra.mxu0 %v1468_v59  ;;  %157 = vmatpush.msra.mxu1 %v1470_v60 }
  0x2c   :  { %2170 = vst [vmem:[#allocation30_spill] sm:$0xff] %v1470_v60  ;;  %197 = vmatpush.msra.mxu3 %v1474_v61  ;;  %138 = vmatmul.f32.vlgmr.msra.gmra.mxu0 %v1270_v63 }
  0x2d   :  { %2171 = vst [vmem:[#allocation31_spill] sm:$0xff] %v1474_v61  ;;  %158 = vmatmul.f32.vlgmr.msra.gmra.mxu1 %v1270_v63  ;;  %198 = vmatmul.f32.vlgmr.msra.gmra.mxu3 %v1270_v63 }
  0x2e   :  { %2172 = vst [vmem:[#allocation32_spill] sm:$0xff] %v1480_v62  ;;  %176 = vmatpush.msra.mxu2 %v1480_v62  ;;  %233 = vmatpush.msrb.mxu0 %v1295_v0 }
  0x2f   :  { %2173 = vst [vmem:[#allocation33_spill] sm:$0xff] %v1483_v55  ;;  %253 = vmatpush.msrb.mxu1 %v1297_v1  ;;  %293 = vmatpush.msrb.mxu3 %v1299_v2 }
  0x30   :  { %177 = vmatpush.msra.mxu2 %v1483_v55  ;;  %234 = vmatpush.msrb.mxu0 %v1303_v3 }
  0x31   :  { %178 = vmatmul.f32.vlgmr.msra.gmra.mxu2 %v1270_v63  ;;  %254 = vmatpush.msrb.mxu1 %v1305_v4  ;;  %v2174_v63 = vld [vmem:[#allocation25_spill] sm:$0xff] }
  0x32   :  { %273 = vmatpush.msrb.mxu2 %v1318_v9  ;;  %294 = vmatpush.msrb.mxu3 %v1307_v5 }
  0x33   :  { %235 = vmatpush.msrb.mxu0 %v1310_v6  ;;  %255 = vmatpush.msrb.mxu1 %v1312_v7 }
  0x34   :  { %274 = vmatpush.msrb.mxu2 %v1326_v12  ;;  %295 = vmatpush.msrb.mxu3 %v1316_v8 }
  0x35   :  { %236 = vmatpush.msrb.mxu0 %v1322_v10  ;;  %256 = vmatpush.msrb.mxu1 %v1324_v11 }
  0x36   :  { %275 = vmatpush.msrb.mxu2 %v1332_v14  ;;  %296 = vmatpush.msrb.mxu3 %v1330_v13 }
  0x37   :  { %237 = vmatpush.msrb.mxu0 %v1336_v15  ;;  %257 = vmatpush.msrb.mxu1 %v1338_v16 }
  0x38   :  { %276 = vmatpush.msrb.mxu2 %v1344_v18  ;;  %297 = vmatpush.msrb.mxu3 %v1342_v17 }
  0x39   :  { %238 = vmatpush.msrb.mxu0 %v1348_v19  ;;  %258 = vmatpush.msrb.mxu1 %v1350_v20 }
  0x3a   :  { %277 = vmatpush.msrb.mxu2 %v1356_v22  ;;  %298 = vmatpush.msrb.mxu3 %v1354_v21 }
  0x3b   :  { %239 = vmatpush.msrb.mxu0 %v1360_v23  ;;  %259 = vmatpush.msrb.mxu1 %v1362_v24 }
  0x3c   :  { %278 = vmatpush.msrb.mxu2 %v1368_v26  ;;  %299 = vmatpush.msrb.mxu3 %v1366_v25 }
  0x3d   :  { %240 = vmatpush.msrb.mxu0 %v1372_v27  ;;  %260 = vmatpush.msrb.mxu1 %v1374_v28 }
  0x3e   :  { %279 = vmatpush.msrb.mxu2 %v1380_v30  ;;  %300 = vmatpush.msrb.mxu3 %v1378_v29 }
  0x3f   :  { %241 = vmatpush.msrb.mxu0 %v1384_v31  ;;  %261 = vmatpush.msrb.mxu1 %v1386_v32 }
  0x40   :  { %280 = vmatpush.msrb.mxu2 %v1392_v34  ;;  %301 = vmatpush.msrb.mxu3 %v1390_v33 }
  0x41   :  { %242 = vmatpush.msrb.mxu0 %v1396_v35  ;;  %262 = vmatpush.msrb.mxu1 %v1398_v36 }
  0x42   :  { %281 = vmatpush.msrb.mxu2 %v1404_v38  ;;  %302 = vmatpush.msrb.mxu3 %v1402_v37 }
  0x43   :  { %243 = vmatpush.msrb.mxu0 %v1408_v39  ;;  %263 = vmatpush.msrb.mxu1 %v1410_v40 }
  0x44   :  { %282 = vmatpush.msrb.mxu2 %v1416_v42  ;;  %303 = vmatpush.msrb.mxu3 %v1414_v41 }
  0x45   :  { %244 = vmatpush.msrb.mxu0 %v1420_v43  ;;  %264 = vmatpush.msrb.mxu1 %v1422_v44 }
  0x46   :  { %283 = vmatpush.msrb.mxu2 %v1428_v46  ;;  %304 = vmatpush.msrb.mxu3 %v1426_v45 }
  0x47   :  { %245 = vmatpush.msrb.mxu0 %v1432_v47  ;;  %265 = vmatpush.msrb.mxu1 %v1434_v48 }
  0x48   :  { %284 = vmatpush.msrb.mxu2 %v1440_v50  ;;  %305 = vmatpush.msrb.mxu3 %v1438_v49 }
  0x49   :  { %246 = vmatpush.msrb.mxu0 %v1444_v51  ;;  %266 = vmatpush.msrb.mxu1 %v1446_v52 }
  0x4a   :  { %285 = vmatpush.msrb.mxu2 %v1452_v54  ;;  %306 = vmatpush.msrb.mxu3 %v1450_v53 }
  0x4b   :  { %247 = vmatpush.msrb.mxu0 %v2174_v63  ;;  %267 = vmatpush.msrb.mxu1 %v1458_v56 }
  0x4c   :  { %286 = vmatpush.msrb.mxu2 %v1464_v58  ;;  %307 = vmatpush.msrb.mxu3 %v1462_v57 }
  0x4d   :  { %248 = vmatpush.msrb.mxu0 %v1468_v59  ;;  %268 = vmatpush.msrb.mxu1 %v1470_v60 }
  0x4e   :  { %287 = vmatpush.msrb.mxu2 %v1480_v62  ;;  %308 = vmatpush.msrb.mxu3 %v1474_v61 }
  0x4f   :  { %345 = vmatpush.msra.mxu0 %v1295_v0  ;;  %365 = vmatpush.msra.mxu1 %v1297_v1 }
  0x50   :  { %288 = vmatpush.msrb.mxu2 %v1483_v55  ;;  %405 = vmatpush.msra.mxu3 %v1299_v2 }
  0x51   :  { %346 = vmatpush.msra.mxu0 %v1303_v3  ;;  %366 = vmatpush.msra.mxu1 %v1305_v4 }
  0x52   :  { %385 = vmatpush.msra.mxu2 %v1318_v9  ;;  %406 = vmatpush.msra.mxu3 %v1307_v5 }
  0x53   :  { %347 = vmatpush.msra.mxu0 %v1310_v6  ;;  %367 = vmatpush.msra.mxu1 %v1312_v7 }
  0x54   :  { %386 = vmatpush.msra.mxu2 %v1326_v12  ;;  %407 = vmatpush.msra.mxu3 %v1316_v8 }
  0x55   :  { %348 = vmatpush.msra.mxu0 %v1322_v10  ;;  %368 = vmatpush.msra.mxu1 %v1324_v11 }
  0x56   :  { %387 = vmatpush.msra.mxu2 %v1332_v14  ;;  %408 = vmatpush.msra.mxu3 %v1330_v13 }
  0x57   :  { %349 = vmatpush.msra.mxu0 %v1336_v15  ;;  %369 = vmatpush.msra.mxu1 %v1338_v16 }
  0x58   :  { %388 = vmatpush.msra.mxu2 %v1344_v18  ;;  %409 = vmatpush.msra.mxu3 %v1342_v17 }
  0x59   :  { %350 = vmatpush.msra.mxu0 %v1348_v19  ;;  %370 = vmatpush.msra.mxu1 %v1350_v20 }
  0x5a   :  { %389 = vmatpush.msra.mxu2 %v1356_v22  ;;  %410 = vmatpush.msra.mxu3 %v1354_v21 }
  0x5b   :  { %351 = vmatpush.msra.mxu0 %v1360_v23  ;;  %371 = vmatpush.msra.mxu1 %v1362_v24 }
  0x5c   :  { %390 = vmatpush.msra.mxu2 %v1368_v26  ;;  %411 = vmatpush.msra.mxu3 %v1366_v25 }
  0x5d   :  { %352 = vmatpush.msra.mxu0 %v1372_v27  ;;  %372 = vmatpush.msra.mxu1 %v1374_v28 }
  0x5e   :  { %391 = vmatpush.msra.mxu2 %v1380_v30  ;;  %412 = vmatpush.msra.mxu3 %v1378_v29 }
  0x5f   :  { %353 = vmatpush.msra.mxu0 %v1384_v31  ;;  %373 = vmatpush.msra.mxu1 %v1386_v32 }
  0x60   :  { %392 = vmatpush.msra.mxu2 %v1392_v34  ;;  %413 = vmatpush.msra.mxu3 %v1390_v33 }
  0x61   :  { %354 = vmatpush.msra.mxu0 %v1396_v35  ;;  %374 = vmatpush.msra.mxu1 %v1398_v36 }
  0x62   :  { %393 = vmatpush.msra.mxu2 %v1404_v38  ;;  %414 = vmatpush.msra.mxu3 %v1402_v37 }
  0x63   :  { %355 = vmatpush.msra.mxu0 %v1408_v39  ;;  %375 = vmatpush.msra.mxu1 %v1410_v40 }
  0x64   :  { %394 = vmatpush.msra.mxu2 %v1416_v42  ;;  %415 = vmatpush.msra.mxu3 %v1414_v41 }
  0x65   :  { %356 = vmatpush.msra.mxu0 %v1420_v43  ;;  %376 = vmatpush.msra.mxu1 %v1422_v44 }
  0x66   :  { %395 = vmatpush.msra.mxu2 %v1428_v46  ;;  %416 = vmatpush.msra.mxu3 %v1426_v45 }
  0x67   :  { %357 = vmatpush.msra.mxu0 %v1432_v47  ;;  %377 = vmatpush.msra.mxu1 %v1434_v48 }
  0x68   :  { %396 = vmatpush.msra.mxu2 %v1440_v50  ;;  %417 = vmatpush.msra.mxu3 %v1438_v49 }
  0x69   :  { %358 = vmatpush.msra.mxu0 %v1444_v51  ;;  %378 = vmatpush.msra.mxu1 %v1446_v52  ;;  %v116_v52 = vld [vmem:[#allocation4] sm:$0xff] }
  0x6a   :  { %397 = vmatpush.msra.mxu2 %v1452_v54  ;;  %418 = vmatpush.msra.mxu3 %v1450_v53  ;;  %v118_v53 = vunpack.c.l.bf16 %v116_v52  ;;  %v119_v51 = vunpack.c.h.bf16 %v116_v52  ;;  %v117_v54 = vld [vmem:[#allocation4 + $0x8] sm:$0xff] }
  0x6b   :  { %359 = vmatpush.msra.mxu0 %v2174_v63  ;;  %379 = vmatpush.msra.mxu1 %v1458_v56  ;;  %v121_v47 = vunpack.c.h.bf16 %v117_v54 }
  0x6c   :  { %398 = vmatpush.msra.mxu2 %v1464_v58  ;;  %419 = vmatpush.msra.mxu3 %v1462_v57 }
  0x6d   :  { %360 = vmatpush.msra.mxu0 %v1468_v59  ;;  %380 = vmatpush.msra.mxu1 %v1470_v60  ;;  %v120_v60 = vunpack.c.l.bf16 %v117_v54 }
  0x6e   :  { %399 = vmatpush.msra.mxu2 %v1480_v62  ;;  %420 = vmatpush.msra.mxu3 %v1474_v61 }
  0x70   :  { %400 = vmatpush.msra.mxu2 %v1483_v55 }
  0xa9   :  { %v139_v58 = vpop.f32.mrf.mxu0 }
  0xaa   :  { %v202_v49 = vadd.f32 %v139_v58, %v118_v53  ;;  %v159_v63 = vpop.f32.mrf.mxu1 }
  0xab   :  { %v203_v56 = vadd.f32 %v159_v63, %v119_v51  ;;  %v2183_v63 = vld [vmem:[#allocation19_spill] sm:$0xff] }
  0xac   :  { %v206_v48 = vmul.f32 0.5, %v202_v49 }
  0xad   :  { %v207_v57 = vmul.f32 0.5, %v203_v56 }
  0xae   :  { %1042 = vtanh.f32 %v206_v48 }
  0xaf   :  { %1044 = vtanh.f32 %v207_v57 }
  0xb0   :  { %v199_v59 = vpop.f32.mrf.mxu3 }
  0xb1   :  { %v205_v62 = vadd.f32 %v199_v59, %v121_v47 }
  0xb3   :  { %1046 = vtanh.f32 %v205_v62 }
  0xb4   :  { %v1043_v61 = vpop.eup %1042  ;;  %v179_v45 = vpop.f32.mrf.mxu2 }
  0xb5   :  { %v1045_v55 = vpop.eup %1044  ;;  %v212_v50 = vmul.f32 0.5, %v1043_v61  ;;  %v204_v44 = vadd.f32 %v179_v45, %v120_v60  ;;  %v2178_v45 = vld [vmem:[#allocation20_spill] sm:$0xff]  ;;  %v2181_v60 = vld [vmem:[#allocation18_spill] sm:$0xff] }
  0xb6   :  { %v213_v52 = vmul.f32 0.5, %v1045_v55  ;;  %v2180_v55 = vld [vmem:[#allocation17_spill] sm:$0xff]  ;;  %v2182_v61 = vld [vmem:[#allocation24_spill] sm:$0xff] }
  0xb7   :  { %v215_v43 = vadd.f32 0.5, %v212_v50  ;;  %v208_v53 = vmul.f32 0.5, %v204_v44  ;;  %v2177_v44 = vld [vmem:[#allocation15_spill] sm:$0xff]  ;;  %v2179_v50 = vld [vmem:[#allocation16_spill] sm:$0xff] }
  0xb8   :  { %v216_v58 = vadd.f32 0.5, %v213_v52  ;;  %v2184_v52 = vld [vmem:[#allocation21_spill] sm:$0xff] }
  0xb9   :  { %v1047_v41 = vpop.eup %1046  ;;  %1048 = vtanh.f32 %v208_v53  ;;  %v2185_v53 = vld [vmem:[#allocation22_spill] sm:$0xff] }
  0xba   :  { %v219_v49 = vmul.f32 0.0, %v216_v58  ;;  %v220_v51 = vmul.f32 %v1047_v41, %v215_v43  ;;  %v2175_v41 = vld [vmem:[#allocation13_spill] sm:$0xff]  ;;  %v2176_v43 = vld [vmem:[#allocation14_spill] sm:$0xff]  ;;  %v2186_v58 = vld [vmem:[#allocation28_spill] sm:$0xff] }
  0xbc   :  { %v1615_v56 = vadd.f32 %v220_v51, %v219_v49  ;;  %v2187_v49 = vld [vmem:[#allocation23_spill] sm:$0xff]  ;;  %v2188_v51 = vld [vmem:[#allocation25_spill] sm:$0xff] }
  0xbe   :  { %1050 = vtanh.f32 %v1615_v56 }
  0xbf   :  { %v1049_v47 = vpop.eup %1048 }
  0xc0   :  { %v214_v48 = vmul.f32 0.5, %v1049_v47  ;;  %v2189_v47 = vld [vmem:[#allocation26_spill] sm:$0xff] }
  0xc2   :  { %v217_v54 = vadd.f32 0.5, %v214_v48  ;;  %v2190_v48 = vld [vmem:[#allocation32_spill] sm:$0xff] }
  0xc4   :  { %v1051_v57 = vpop.eup %1050 }
  0xc5   :  { %v223_v59 = vmul.f32 %v1051_v57, %v217_v54  ;;  %v2191_v54 = vld [vmem:[#allocation27_spill] sm:$0xff]  ;;  %v2192_v57 = vld [vmem:[#allocation29_spill] sm:$0xff] }
  0xc7   :  { %v224_v62 = vpack.c.bf16 %v223_v59, %v223_v59  ;;  %249 = vmatmul.f32.vlgmr.msrb.gmra.mxu0 %v223_v59  ;;  %269 = vmatmul.f32.vlgmr.msrb.gmra.mxu1 %v223_v59 }
  0xc8   :  { %289 = vmatmul.f32.vlgmr.msrb.gmra.mxu2 %v223_v59  ;;  %309 = vmatmul.f32.vlgmr.msrb.gmra.mxu3 %v223_v59  ;;  %v2193_v59 = vld [vmem:[#allocation30_spill] sm:$0xff] }
  0xc9   :  { %225 = vst [vmem:[#allocation9] sm:$0xf] %v224_v62  ;;  %457 = vmatpush.msrb.mxu0 %v1295_v0  ;;  %477 = vmatpush.msrb.mxu1 %v1297_v1  ;;  %v2194_v62 = vld [vmem:[#allocation33_spill] sm:$0xff] }
  0xca   :  { %497 = vmatpush.msrb.mxu2 %v1318_v9  ;;  %517 = vmatpush.msrb.mxu3 %v1299_v2 }
  0xcb   :  { %458 = vmatpush.msrb.mxu0 %v1303_v3  ;;  %478 = vmatpush.msrb.mxu1 %v1305_v4 }
  0xcc   :  { %498 = vmatpush.msrb.mxu2 %v1326_v12  ;;  %518 = vmatpush.msrb.mxu3 %v1307_v5 }
  0xcd   :  { %459 = vmatpush.msrb.mxu0 %v1310_v6  ;;  %479 = vmatpush.msrb.mxu1 %v1312_v7 }
  0xce   :  { %499 = vmatpush.msrb.mxu2 %v1332_v14  ;;  %519 = vmatpush.msrb.mxu3 %v1316_v8 }
  0xcf   :  { %460 = vmatpush.msrb.mxu0 %v1322_v10  ;;  %480 = vmatpush.msrb.mxu1 %v1324_v11 }
  0xd0   :  { %500 = vmatpush.msrb.mxu2 %v1344_v18  ;;  %520 = vmatpush.msrb.mxu3 %v1330_v13 }
  0xd1   :  { %461 = vmatpush.msrb.mxu0 %v1336_v15  ;;  %481 = vmatpush.msrb.mxu1 %v1338_v16 }
  0xd2   :  { %501 = vmatpush.msrb.mxu2 %v1356_v22  ;;  %521 = vmatpush.msrb.mxu3 %v1342_v17 }
  0xd3   :  { %462 = vmatpush.msrb.mxu0 %v1348_v19  ;;  %482 = vmatpush.msrb.mxu1 %v1350_v20 }
  0xd4   :  { %502 = vmatpush.msrb.mxu2 %v1368_v26  ;;  %522 = vmatpush.msrb.mxu3 %v1354_v21 }
  0xd5   :  { %463 = vmatpush.msrb.mxu0 %v1360_v23  ;;  %483 = vmatpush.msrb.mxu1 %v1362_v24 }
  0xd6   :  { %503 = vmatpush.msrb.mxu2 %v1380_v30  ;;  %523 = vmatpush.msrb.mxu3 %v1366_v25 }
  0xd7   :  { %464 = vmatpush.msrb.mxu0 %v1372_v27  ;;  %484 = vmatpush.msrb.mxu1 %v1374_v28 }
  0xd8   :  { %504 = vmatpush.msrb.mxu2 %v1392_v34  ;;  %524 = vmatpush.msrb.mxu3 %v1378_v29 }
  0xd9   :  { %465 = vmatpush.msrb.mxu0 %v1384_v31  ;;  %485 = vmatpush.msrb.mxu1 %v1386_v32 }
  0xda   :  { %505 = vmatpush.msrb.mxu2 %v1404_v38  ;;  %525 = vmatpush.msrb.mxu3 %v1390_v33 }
  0xdb   :  { %466 = vmatpush.msrb.mxu0 %v1396_v35  ;;  %486 = vmatpush.msrb.mxu1 %v1398_v36 }
  0xdc   :  { %506 = vmatpush.msrb.mxu2 %v1416_v42  ;;  %526 = vmatpush.msrb.mxu3 %v1402_v37 }
  0xdd   :  { %467 = vmatpush.msrb.mxu0 %v1408_v39  ;;  %487 = vmatpush.msrb.mxu1 %v1410_v40 }
  0xde   :  { %507 = vmatpush.msrb.mxu2 %v1428_v46  ;;  %527 = vmatpush.msrb.mxu3 %v2175_v41 }
  0xdf   :  { %468 = vmatpush.msrb.mxu0 %v2176_v43  ;;  %488 = vmatpush.msrb.mxu1 %v2177_v44 }
  0xe0   :  { %508 = vmatpush.msrb.mxu2 %v2178_v45  ;;  %528 = vmatpush.msrb.mxu3 %v2179_v50 }
  0xe1   :  { %469 = vmatpush.msrb.mxu0 %v2180_v55  ;;  %489 = vmatpush.msrb.mxu1 %v2181_v60 }
  0xe2   :  { %509 = vmatpush.msrb.mxu2 %v2182_v61  ;;  %529 = vmatpush.msrb.mxu3 %v2183_v63 }
  0xe3   :  { %470 = vmatpush.msrb.mxu0 %v2184_v52  ;;  %490 = vmatpush.msrb.mxu1 %v2185_v53  ;;  %v2195_v52 = vld [vmem:[#allocation31_spill] sm:$0xff] }
  0xe4   :  { %510 = vmatpush.msrb.mxu2 %v2186_v58  ;;  %530 = vmatpush.msrb.mxu3 %v2187_v49  ;;  %v227_v53 = vld [vmem:[#allocation4 + $0x10] sm:$0xff] }
  0xe5   :  { %471 = vmatpush.msrb.mxu0 %v2188_v51  ;;  %491 = vmatpush.msrb.mxu1 %v2189_v47  ;;  %v229_v58 = vunpack.c.l.bf16 %v227_v53  ;;  %v230_v63 = vunpack.c.h.bf16 %v227_v53  ;;  %v228_v47 = vld [vmem:[#allocation4 + $0x18] sm:$0xff] }
  0xe6   :  { %511 = vmatpush.msrb.mxu2 %v2190_v48  ;;  %531 = vmatpush.msrb.mxu3 %v2191_v54  ;;  %v231_v50 = vunpack.c.l.bf16 %v228_v47  ;;  %v232_v54 = vunpack.c.h.bf16 %v228_v47 }
  0xe7   :  { %472 = vmatpush.msrb.mxu0 %v2192_v57  ;;  %492 = vmatpush.msrb.mxu1 %v2193_v59 }
  0xe8   :  { %512 = vmatpush.msrb.mxu2 %v2194_v62  ;;  %532 = vmatpush.msrb.mxu3 %v2195_v52 }
 0x144   :  { %v250_v49 = vpop.f32.mrf.mxu0  ;;  %v270_v61 = vpop.f32.mrf.mxu1 }
 0x145   :  { %v313_v51 = vadd.f32 %v250_v49, %v229_v58  ;;  %v314_v60 = vadd.f32 %v270_v61, %v230_v63 }
 0x147   :  { %v317_v55 = vmul.f32 0.5, %v313_v51  ;;  %v318_v48 = vmul.f32 0.5, %v314_v60 }
 0x149   :  { %1052 = vtanh.f32 %v317_v55 }
 0x14a   :  { %1054 = vtanh.f32 %v318_v48 }
 0x14b   :  { %v290_v57 = vpop.f32.mrf.mxu2  ;;  %v310_v59 = vpop.f32.mrf.mxu3 }
 0x14c   :  { %v315_v45 = vadd.f32 %v290_v57, %v231_v50  ;;  %v316_v62 = vadd.f32 %v310_v59, %v232_v54  ;;  %v2212_v57 = vld [vmem:[#allocation27_spill] sm:$0xff]  ;;  %v2213_v59 = vld [vmem:[#allocation29_spill] sm:$0xff] }
 0x14e   :  { %v319_v44 = vmul.f32 0.5, %v315_v45  ;;  %1056 = vtanh.f32 %v316_v62  ;;  %v2214_v62 = vld [vmem:[#allocation30_spill] sm:$0xff] }
 0x14f   :  { %v1053_v52 = vpop.eup %1052 }
 0x150   :  { %v1055_v43 = vpop.eup %1054  ;;  %v323_v53 = vmul.f32 0.5, %v1053_v52  ;;  %1058 = vtanh.f32 %v319_v44  ;;  %v2210_v44 = vld [vmem:[#allocation26_spill] sm:$0xff]  ;;  %v2211_v52 = vld [vmem:[#allocation32_spill] sm:$0xff] }
 0x151   :  { %v324_v41 = vmul.f32 0.5, %v1055_v43  ;;  %v2209_v43 = vld [vmem:[#allocation25_spill] sm:$0xff] }
 0x152   :  { %v326_v58 = vadd.f32 0.5, %v323_v53  ;;  %v2215_v53 = vld [vmem:[#allocation33_spill] sm:$0xff] }
 0x153   :  { %v327_v61 = vadd.f32 0.5, %v324_v41  ;;  %v2208_v41 = vld [vmem:[#allocation23_spill] sm:$0xff] }
 0x154   :  { %v1057_v63 = vpop.eup %1056 }
 0x155   :  { %v330_v60 = vmul.f32 %v327_v61, %v1615_v56  ;;  %v331_v49 = vmul.f32 %v1057_v63, %v326_v58  ;;  %v2207_v56 = vld [vmem:[#allocation28_spill] sm:$0xff]  ;;  %v2216_v58 = vld [vmem:[#allocation31_spill] sm:$0xff]  ;;  %v339_v61 = vld [vmem:[#allocation4 + $0x20] sm:$0xff] }
 0x156   :  { %v1059_v51 = vpop.eup %1058  ;;  %v341_v63 = vunpack.c.l.bf16 %v339_v61 }
 0x157   :  { %v1683_v55 = vadd.f32 %v331_v49, %v330_v60  ;;  %v325_v50 = vmul.f32 0.5, %v1059_v51  ;;  %v342_v60 = vunpack.c.h.bf16 %v339_v61 }
 0x159   :  { %1060 = vtanh.f32 %v1683_v55  ;;  %v328_v47 = vadd.f32 0.5, %v325_v50 }
 0x15f   :  { %v1061_v45 = vpop.eup %1060 }
 0x160   :  { %v334_v48 = vmul.f32 %v1061_v45, %v328_v47  ;;  %v340_v45 = vld [vmem:[#allocation4 + $0x28] sm:$0xff] }
 0x162   :  { %v335_v54 = vpack.c.bf16 %v334_v48, %v334_v48  ;;  %361 = vmatmul.f32.vlgmr.msra.gmra.mxu0 %v334_v48  ;;  %381 = vmatmul.f32.vlgmr.msra.gmra.mxu1 %v334_v48 }
 0x163   :  { %401 = vmatmul.f32.vlgmr.msra.gmra.mxu2 %v334_v48  ;;  %421 = vmatmul.f32.vlgmr.msra.gmra.mxu3 %v334_v48 }
 0x164   :  { %337 = vst [vmem:[#allocation9 + $0x4] sm:$0xf] %v335_v54  ;;  %569 = vmatpush.msra.mxu0 %v1295_v0  ;;  %589 = vmatpush.msra.mxu1 %v1297_v1  ;;  %v2196_v0 = vld [vmem:[#allocation13_spill] sm:$0xff]  ;;  %v2197_v1 = vld [vmem:[#allocation14_spill] sm:$0xff] }
 0x165   :  { %609 = vmatpush.msra.mxu2 %v1318_v9  ;;  %629 = vmatpush.msra.mxu3 %v1299_v2  ;;  %v2198_v2 = vld [vmem:[#allocation15_spill] sm:$0xff] }
 0x166   :  { %570 = vmatpush.msra.mxu0 %v1303_v3  ;;  %590 = vmatpush.msra.mxu1 %v1305_v4  ;;  %v2199_v3 = vld [vmem:[#allocation20_spill] sm:$0xff] }
 0x167   :  { %610 = vmatpush.msra.mxu2 %v1326_v12  ;;  %630 = vmatpush.msra.mxu3 %v1307_v5  ;;  %v2200_v4 = vld [vmem:[#allocation16_spill] sm:$0xff]  ;;  %v2201_v5 = vld [vmem:[#allocation17_spill] sm:$0xff] }
 0x168   :  { %571 = vmatpush.msra.mxu0 %v1310_v6  ;;  %591 = vmatpush.msra.mxu1 %v1312_v7  ;;  %v2202_v6 = vld [vmem:[#allocation18_spill] sm:$0xff]  ;;  %v2203_v7 = vld [vmem:[#allocation24_spill] sm:$0xff] }
 0x169   :  { %611 = vmatpush.msra.mxu2 %v1332_v14  ;;  %631 = vmatpush.msra.mxu3 %v1316_v8  ;;  %v2204_v8 = vld [vmem:[#allocation19_spill] sm:$0xff] }
 0x16a   :  { %572 = vmatpush.msra.mxu0 %v1322_v10  ;;  %592 = vmatpush.msra.mxu1 %v1324_v11  ;;  %v2205_v10 = vld [vmem:[#allocation21_spill] sm:$0xff]  ;;  %v2206_v11 = vld [vmem:[#allocation22_spill] sm:$0xff] }
 0x16b   :  { %612 = vmatpush.msra.mxu2 %v1344_v18  ;;  %632 = vmatpush.msra.mxu3 %v1330_v13 }
 0x16c   :  { %573 = vmatpush.msra.mxu0 %v1336_v15  ;;  %593 = vmatpush.msra.mxu1 %v1338_v16 }
 0x16d   :  { %613 = vmatpush.msra.mxu2 %v1356_v22  ;;  %633 = vmatpush.msra.mxu3 %v1342_v17 }
 0x16e   :  { %574 = vmatpush.msra.mxu0 %v1348_v19  ;;  %594 = vmatpush.msra.mxu1 %v1350_v20 }
 0x16f   :  { %614 = vmatpush.msra.mxu2 %v1368_v26  ;;  %634 = vmatpush.msra.mxu3 %v1354_v21 }
 0x170   :  { %575 = vmatpush.msra.mxu0 %v1360_v23  ;;  %595 = vmatpush.msra.mxu1 %v1362_v24 }
 0x171   :  { %615 = vmatpush.msra.mxu2 %v1380_v30  ;;  %635 = vmatpush.msra.mxu3 %v1366_v25 }
 0x172   :  { %576 = vmatpush.msra.mxu0 %v1372_v27  ;;  %596 = vmatpush.msra.mxu1 %v1374_v28 }
 0x173   :  { %616 = vmatpush.msra.mxu2 %v1392_v34  ;;  %636 = vmatpush.msra.mxu3 %v1378_v29 }
 0x174   :  { %577 = vmatpush.msra.mxu0 %v1384_v31  ;;  %597 = vmatpush.msra.mxu1 %v1386_v32 }
 0x175   :  { %617 = vmatpush.msra.mxu2 %v1404_v38  ;;  %637 = vmatpush.msra.mxu3 %v1390_v33 }
 0x176   :  { %578 = vmatpush.msra.mxu0 %v1396_v35  ;;  %598 = vmatpush.msra.mxu1 %v1398_v36 }
 0x177   :  { %618 = vmatpush.msra.mxu2 %v1416_v42  ;;  %638 = vmatpush.msra.mxu3 %v1402_v37 }
 0x178   :  { %579 = vmatpush.msra.mxu0 %v1408_v39  ;;  %599 = vmatpush.msra.mxu1 %v1410_v40 }
 0x179   :  { %619 = vmatpush.msra.mxu2 %v1428_v46  ;;  %639 = vmatpush.msra.mxu3 %v2196_v0 }
 0x17a   :  { %580 = vmatpush.msra.mxu0 %v2197_v1  ;;  %600 = vmatpush.msra.mxu1 %v2198_v2 }
 0x17b   :  { %620 = vmatpush.msra.mxu2 %v2199_v3  ;;  %640 = vmatpush.msra.mxu3 %v2200_v4 }
 0x17c   :  { %581 = vmatpush.msra.mxu0 %v2201_v5  ;;  %601 = vmatpush.msra.mxu1 %v2202_v6 }
 0x17d   :  { %621 = vmatpush.msra.mxu2 %v2203_v7  ;;  %641 = vmatpush.msra.mxu3 %v2204_v8 }
 0x17e   :  { %582 = vmatpush.msra.mxu0 %v2205_v10  ;;  %602 = vmatpush.msra.mxu1 %v2206_v11 }
 0x17f   :  { %622 = vmatpush.msra.mxu2 %v2207_v56  ;;  %642 = vmatpush.msra.mxu3 %v2208_v41 }
 0x180   :  { %583 = vmatpush.msra.mxu0 %v2209_v43  ;;  %603 = vmatpush.msra.mxu1 %v2210_v44 }
 0x181   :  { %623 = vmatpush.msra.mxu2 %v2211_v52  ;;  %643 = vmatpush.msra.mxu3 %v2212_v57  ;;  %v343_v52 = vunpack.c.l.bf16 %v340_v45  ;;  %v344_v57 = vunpack.c.h.bf16 %v340_v45 }
 0x182   :  { %584 = vmatpush.msra.mxu0 %v2213_v59  ;;  %604 = vmatpush.msra.mxu1 %v2214_v62 }
 0x183   :  { %624 = vmatpush.msra.mxu2 %v2215_v53  ;;  %644 = vmatpush.msra.mxu3 %v2216_v58 }
 0x1df   :  { %v362_v49 = vpop.f32.mrf.mxu0  ;;  %v382_v51 = vpop.f32.mrf.mxu1 }
 0x1e0   :  { %v425_v50 = vadd.f32 %v362_v49, %v341_v63  ;;  %v426_v47 = vadd.f32 %v382_v51, %v342_v60 }
 0x1e2   :  { %v429_v48 = vmul.f32 0.5, %v425_v50  ;;  %v430_v54 = vmul.f32 0.5, %v426_v47 }
 0x1e4   :  { %1062 = vtanh.f32 %v429_v48  ;;  %v1774_v48 = vld [vmem:[#allocation7 + $0x1a0] sm:$0xff] }
 0x1e5   :  { %1064 = vtanh.f32 %v430_v54  ;;  %v1781_v54 = vld [vmem:[#allocation7 + $0x1b8] sm:$0xff] }
 0x1e6   :  { %v402_v59 = vpop.f32.mrf.mxu2  ;;  %v422_v62 = vpop.f32.mrf.mxu3 }
 0x1e7   :  { %v427_v44 = vadd.f32 %v402_v59, %v343_v52  ;;  %v428_v53 = vadd.f32 %v422_v62, %v344_v57 }
 0x1e9   :  { %v431_v43 = vmul.f32 0.5, %v427_v44  ;;  %1066 = vtanh.f32 %v428_v53  ;;  %v1767_v53 = vld [vmem:[#allocation7 + $0x1c8] sm:$0xff] }
 0x1ea   :  { %v1063_v58 = vpop.eup %1062 }
 0x1eb   :  { %v1065_v41 = vpop.eup %1064  ;;  %v435_v61 = vmul.f32 0.5, %v1063_v58  ;;  %1068 = vtanh.f32 %v431_v43  ;;  %v1764_v43 = vld [vmem:[#allocation7 + $0x1c0] sm:$0xff]  ;;  %v1771_v58 = vld [vmem:[#allocation7 + $0x1d8] sm:$0xff] }
 0x1ec   :  { %v436_v56 = vmul.f32 0.5, %v1065_v41  ;;  %v1761_v41 = vld [vmem:[#allocation7 + $0x1f8] sm:$0xff] }
 0x1ed   :  { %v438_v63 = vadd.f32 0.5, %v435_v61  ;;  %v1784_v61 = vld [vmem:[#allocation7 + $0x180] sm:$0xff] }
 0x1ee   :  { %v439_v60 = vadd.f32 0.5, %v436_v56  ;;  %v1754_v56 = vld [vmem:[#allocation7 + $0x1e0] sm:$0xff] }
 0x1ef   :  { %v1067_v49 = vpop.eup %1066 }
 0x1f0   :  { %v442_v51 = vmul.f32 %v439_v60, %v1683_v55  ;;  %v443_v50 = vmul.f32 %v1067_v49, %v438_v63  ;;  %v1757_v55 = vld [vmem:[#allocation7 + $0x1e8] sm:$0xff]  ;;  %v1846_v49 = vld [vmem:[#allocation7 + $0x1f0] sm:$0xff] }
 0x1f1   :  { %v1069_v47 = vpop.eup %1068 }
 0x1f2   :  { %v1751_v45 = vadd.f32 %v443_v50, %v442_v51  ;;  %v437_v52 = vmul.f32 0.5, %v1069_v47  ;;  %v1852_v51 = vld [vmem:[#allocation7 + $0x1d0] sm:$0xff] }
 0x1f3   :  { %v1858_v50 = vld [vmem:[#allocation7 + $0x1b0] sm:$0xff] }
 0x1f4   :  { %1070 = vtanh.f32 %v1751_v45  ;;  %v440_v57 = vadd.f32 0.5, %v437_v52  ;;  %v1864_v47 = vld [vmem:[#allocation7 + $0x190] sm:$0xff]  ;;  %v1870_v52 = vld [vmem:[#allocation7 + $0x160] sm:$0xff] }
 0x1fa   :  { %v1071_v44 = vpop.eup %1070 }
 0x1fb   :  { %v446_v59 = vmul.f32 %v1071_v44, %v440_v57  ;;  %v1873_v57 = vld [vmem:[#allocation7 + $0x168] sm:$0xff]  ;;  %v1876_v44 = vld [vmem:[#allocation7 + $0x170] sm:$0xff] }
 0x1fd   :  { %v447_v62 = vpack.c.bf16 %v446_v59, %v446_v59  ;;  %473 = vmatmul.f32.vlgmr.msrb.gmra.mxu0 %v446_v59  ;;  %493 = vmatmul.f32.vlgmr.msrb.gmra.mxu1 %v446_v59 }
 0x1fe   :  { %513 = vmatmul.f32.vlgmr.msrb.gmra.mxu2 %v446_v59  ;;  %533 = vmatmul.f32.vlgmr.msrb.gmra.mxu3 %v446_v59  ;;  %v1879_v59 = vld [vmem:[#allocation7 + $0x178] sm:$0xff] }
 0x1ff   :  { %449 = vst [vmem:[#allocation9 + $0x8] sm:$0xf] %v447_v62  ;;  %681 = vmatpush.msrb.mxu0 %v1754_v56  ;;  %701 = vmatpush.msrb.mxu1 %v1757_v55  ;;  %v1882_v62 = vld [vmem:[#allocation7 + $0x140] sm:$0xff] }
 0x200   :  { %721 = vmatpush.msrb.mxu2 %v1318_v9  ;;  %741 = vmatpush.msrb.mxu3 %v1761_v41  ;;  %v1777_v9 = vld [vmem:[#allocation7 + $0x1a8] sm:$0xff] }
 0x201   :  { %682 = vmatpush.msrb.mxu0 %v1764_v43  ;;  %702 = vmatpush.msrb.mxu1 %v1767_v53 }
 0x202   :  { %722 = vmatpush.msrb.mxu2 %v1326_v12  ;;  %742 = vmatpush.msrb.mxu3 %v1771_v58  ;;  %v1787_v12 = vld [vmem:[#allocation7 + $0x188] sm:$0xff] }
 0x203   :  { %683 = vmatpush.msrb.mxu0 %v1774_v48  ;;  %703 = vmatpush.msrb.mxu1 %v1777_v9 }
 0x204   :  { %723 = vmatpush.msrb.mxu2 %v1332_v14  ;;  %743 = vmatpush.msrb.mxu3 %v1781_v54  ;;  %v2218_v14 = vld [vmem:[#allocation23_spill] sm:$0xff] }
 0x205   :  { %684 = vmatpush.msrb.mxu0 %v1784_v61  ;;  %704 = vmatpush.msrb.mxu1 %v1787_v12 }
 0x206   :  { %724 = vmatpush.msrb.mxu2 %v1344_v18  ;;  %744 = vmatpush.msrb.mxu3 %v1330_v13  ;;  %v2217_v13 = vld [vmem:[#allocation28_spill] sm:$0xff]  ;;  %v2222_v18 = vld [vmem:[#allocation27_spill] sm:$0xff] }
 0x207   :  { %685 = vmatpush.msrb.mxu0 %v1336_v15  ;;  %705 = vmatpush.msrb.mxu1 %v1338_v16  ;;  %v2219_v15 = vld [vmem:[#allocation25_spill] sm:$0xff]  ;;  %v2220_v16 = vld [vmem:[#allocation26_spill] sm:$0xff] }
 0x208   :  { %725 = vmatpush.msrb.mxu2 %v1356_v22  ;;  %745 = vmatpush.msrb.mxu3 %v1342_v17  ;;  %v2221_v17 = vld [vmem:[#allocation32_spill] sm:$0xff]  ;;  %v2226_v22 = vld [vmem:[#allocation31_spill] sm:$0xff] }
 0x209   :  { %686 = vmatpush.msrb.mxu0 %v1348_v19  ;;  %706 = vmatpush.msrb.mxu1 %v1350_v20  ;;  %v2223_v19 = vld [vmem:[#allocation29_spill] sm:$0xff]  ;;  %v2224_v20 = vld [vmem:[#allocation30_spill] sm:$0xff] }
 0x20a   :  { %726 = vmatpush.msrb.mxu2 %v1368_v26  ;;  %746 = vmatpush.msrb.mxu3 %v1354_v21  ;;  %v2225_v21 = vld [vmem:[#allocation33_spill] sm:$0xff] }
 0x20b   :  { %687 = vmatpush.msrb.mxu0 %v1360_v23  ;;  %707 = vmatpush.msrb.mxu1 %v1362_v24  ;;  %v451_v23 = vld [vmem:[#allocation4 + $0x30] sm:$0xff] }
 0x20c   :  { %727 = vmatpush.msrb.mxu2 %v1380_v30  ;;  %747 = vmatpush.msrb.mxu3 %v1366_v25  ;;  %v453_v24 = vunpack.c.l.bf16 %v451_v23  ;;  %v454_v25 = vunpack.c.h.bf16 %v451_v23  ;;  %v452_v30 = vld [vmem:[#allocation4 + $0x38] sm:$0xff] }
 0x20d   :  { %688 = vmatpush.msrb.mxu0 %v1372_v27  ;;  %708 = vmatpush.msrb.mxu1 %v1374_v28  ;;  %v1915_v23 = vld [vmem:[#allocation7 + $0x118] sm:$0xff] }
 0x20e   :  { %728 = vmatpush.msrb.mxu2 %v1392_v34  ;;  %748 = vmatpush.msrb.mxu3 %v1378_v29  ;;  %v456_v34 = vunpack.c.h.bf16 %v452_v30 }
 0x20f   :  { %689 = vmatpush.msrb.mxu0 %v1384_v31  ;;  %709 = vmatpush.msrb.mxu1 %v1386_v32 }
 0x210   :  { %729 = vmatpush.msrb.mxu2 %v1404_v38  ;;  %749 = vmatpush.msrb.mxu3 %v1390_v33  ;;  %v455_v33 = vunpack.c.l.bf16 %v452_v30  ;;  %v1936_v30 = vld [vmem:[#allocation7 + $0xd0] sm:$0xff] }
 0x211   :  { %690 = vmatpush.msrb.mxu0 %v1396_v35  ;;  %710 = vmatpush.msrb.mxu1 %v1398_v36 }
 0x212   :  { %730 = vmatpush.msrb.mxu2 %v1416_v42  ;;  %750 = vmatpush.msrb.mxu3 %v1402_v37 }
 0x213   :  { %691 = vmatpush.msrb.mxu0 %v1408_v39  ;;  %711 = vmatpush.msrb.mxu1 %v1410_v40 }
 0x214   :  { %731 = vmatpush.msrb.mxu2 %v1428_v46  ;;  %751 = vmatpush.msrb.mxu3 %v2196_v0 }
 0x215   :  { %692 = vmatpush.msrb.mxu0 %v2197_v1  ;;  %712 = vmatpush.msrb.mxu1 %v2198_v2 }
 0x216   :  { %732 = vmatpush.msrb.mxu2 %v2199_v3  ;;  %752 = vmatpush.msrb.mxu3 %v2200_v4 }
 0x217   :  { %693 = vmatpush.msrb.mxu0 %v2201_v5  ;;  %713 = vmatpush.msrb.mxu1 %v2202_v6 }
 0x218   :  { %733 = vmatpush.msrb.mxu2 %v2203_v7  ;;  %753 = vmatpush.msrb.mxu3 %v2204_v8 }
 0x219   :  { %694 = vmatpush.msrb.mxu0 %v2205_v10  ;;  %714 = vmatpush.msrb.mxu1 %v2206_v11 }
 0x21a   :  { %734 = vmatpush.msrb.mxu2 %v2217_v13  ;;  %754 = vmatpush.msrb.mxu3 %v2218_v14  ;;  %v1885_v13 = vld [vmem:[#allocation7 + $0x148] sm:$0xff]  ;;  %v1888_v14 = vld [vmem:[#allocation7 + $0x150] sm:$0xff] }
 0x21b   :  { %695 = vmatpush.msrb.mxu0 %v2219_v15  ;;  %715 = vmatpush.msrb.mxu1 %v2220_v16  ;;  %v1891_v15 = vld [vmem:[#allocation7 + $0x158] sm:$0xff]  ;;  %v1894_v16 = vld [vmem:[#allocation7 + $0x120] sm:$0xff] }
 0x21c   :  { %735 = vmatpush.msrb.mxu2 %v2221_v17  ;;  %755 = vmatpush.msrb.mxu3 %v2222_v18  ;;  %v1897_v17 = vld [vmem:[#allocation7 + $0x128] sm:$0xff]  ;;  %v1900_v18 = vld [vmem:[#allocation7 + $0x130] sm:$0xff] }
 0x21d   :  { %696 = vmatpush.msrb.mxu0 %v2223_v19  ;;  %716 = vmatpush.msrb.mxu1 %v2224_v20  ;;  %v1903_v19 = vld [vmem:[#allocation7 + $0x138] sm:$0xff]  ;;  %v1906_v20 = vld [vmem:[#allocation7 + $0x100] sm:$0xff] }
 0x21e   :  { %736 = vmatpush.msrb.mxu2 %v2225_v21  ;;  %756 = vmatpush.msrb.mxu3 %v2226_v22  ;;  %v1909_v21 = vld [vmem:[#allocation7 + $0x108] sm:$0xff]  ;;  %v1912_v22 = vld [vmem:[#allocation7 + $0x110] sm:$0xff] }
 0x27a   :  { %v474_v26 = vpop.f32.mrf.mxu0  ;;  %v494_v27 = vpop.f32.mrf.mxu1 }
 0x27b   :  { %v537_v28 = vadd.f32 %v474_v26, %v453_v24  ;;  %v538_v29 = vadd.f32 %v494_v27, %v454_v25  ;;  %v1918_v24 = vld [vmem:[#allocation7 + $0xe0] sm:$0xff]  ;;  %v1921_v25 = vld [vmem:[#allocation7 + $0xe8] sm:$0xff]  ;;  %v1924_v26 = vld [vmem:[#allocation7 + $0xf0] sm:$0xff] }
 0x27c   :  { %v1927_v27 = vld [vmem:[#allocation7 + $0xf8] sm:$0xff] }
 0x27d   :  { %v541_v31 = vmul.f32 0.5, %v537_v28  ;;  %v542_v32 = vmul.f32 0.5, %v538_v29  ;;  %v1930_v28 = vld [vmem:[#allocation7 + $0xc0] sm:$0xff]  ;;  %v1933_v29 = vld [vmem:[#allocation7 + $0xc8] sm:$0xff] }
 0x27f   :  { %1072 = vtanh.f32 %v541_v31  ;;  %v1939_v31 = vld [vmem:[#allocation7 + $0xd8] sm:$0xff] }
 0x280   :  { %1074 = vtanh.f32 %v542_v32  ;;  %v1942_v32 = vld [vmem:[#allocation7 + $0xa0] sm:$0xff] }
 0x281   :  { %v514_v35 = vpop.f32.mrf.mxu2  ;;  %v534_v36 = vpop.f32.mrf.mxu3 }
 0x282   :  { %v539_v37 = vadd.f32 %v514_v35, %v455_v33  ;;  %v540_v38 = vadd.f32 %v534_v36, %v456_v34  ;;  %v1945_v33 = vld [vmem:[#allocation7 + $0xa8] sm:$0xff]  ;;  %v1948_v34 = vld [vmem:[#allocation7 + $0xb0] sm:$0xff]  ;;  %v1951_v35 = vld [vmem:[#allocation7 + $0xb8] sm:$0xff] }
 0x283   :  { %2227 = vst [vmem:[#allocation13_spill] sm:$0xff] %v1951_v35  ;;  %v1954_v36 = vld [vmem:[#allocation7 + $0x80] sm:$0xff] }
 0x284   :  { %v543_v39 = vmul.f32 0.5, %v539_v37  ;;  %1076 = vtanh.f32 %v540_v38  ;;  %2228 = vst [vmem:[#allocation14_spill] sm:$0xff] %v1954_v36  ;;  %v1957_v37 = vld [vmem:[#allocation7 + $0x88] sm:$0xff]  ;;  %v1960_v38 = vld [vmem:[#allocation7 + $0x90] sm:$0xff] }
 0x285   :  { %v1073_v40 = vpop.eup %1072  ;;  %2229 = vst [vmem:[#allocation15_spill] sm:$0xff] %v1957_v37 }
 0x286   :  { %v1075_v42 = vpop.eup %1074  ;;  %v547_v46 = vmul.f32 0.5, %v1073_v40  ;;  %1078 = vtanh.f32 %v543_v39  ;;  %2230 = vst [vmem:[#allocation20_spill] sm:$0xff] %v1960_v38  ;;  %v1963_v39 = vld [vmem:[#allocation7 + $0x98] sm:$0xff]  ;;  %v1966_v40 = vld [vmem:[#allocation7 + $0x60] sm:$0xff] }
 0x287   :  { %v548_v0 = vmul.f32 0.5, %v1075_v42  ;;  %2231 = vst [vmem:[#allocation16_spill] sm:$0xff] %v1963_v39  ;;  %v1969_v42 = vld [vmem:[#allocation7 + $0x68] sm:$0xff] }
 0x288   :  { %v550_v1 = vadd.f32 0.5, %v547_v46  ;;  %2232 = vst [vmem:[#allocation17_spill] sm:$0xff] %v1966_v40  ;;  %v1972_v46 = vld [vmem:[#allocation7 + $0x70] sm:$0xff] }
 0x289   :  { %v551_v2 = vadd.f32 0.5, %v548_v0  ;;  %2233 = vst [vmem:[#allocation18_spill] sm:$0xff] %v1969_v42  ;;  %v1975_v0 = vld [vmem:[#allocation7 + $0x78] sm:$0xff] }
 0x28a   :  { %v1077_v3 = vpop.eup %1076  ;;  %2234 = vst [vmem:[#allocation24_spill] sm:$0xff] %v1972_v46 }
 0x28b   :  { %v554_v4 = vmul.f32 %v551_v2, %v1751_v45  ;;  %v555_v5 = vmul.f32 %v1077_v3, %v550_v1  ;;  %v1867_v45 = vld [vmem:[#allocation7 + $0x198] sm:$0xff]  ;;  %2235 = vst [vmem:[#allocation19_spill] sm:$0xff] %v1975_v0  ;;  %v1978_v1 = vld [vmem:[#allocation7 + $0x40] sm:$0xff]  ;;  %v1981_v2 = vld [vmem:[#allocation7 + $0x48] sm:$0xff] }
 0x28c   :  { %v1079_v6 = vpop.eup %1078  ;;  %2236 = vst [vmem:[#allocation21_spill] sm:$0xff] %v1978_v1  ;;  %v1984_v3 = vld [vmem:[#allocation7 + $0x50] sm:$0xff] }
 0x28d   :  { %v1841_v7 = vadd.f32 %v555_v5, %v554_v4  ;;  %v549_v8 = vmul.f32 0.5, %v1079_v6  ;;  %2237 = vst [vmem:[#allocation22_spill] sm:$0xff] %v1981_v2  ;;  %v1987_v4 = vld [vmem:[#allocation7 + $0x58] sm:$0xff]  ;;  %v1990_v5 = vld [vmem:[#allocation7 + $0x20] sm:$0xff]  ;;  %v1993_v6 = vld [vmem:[#allocation7 + $0x28] sm:$0xff] }
 0x28e   :  { %2238 = vst [vmem:[#allocation28_spill] sm:$0xff] %v1984_v3 }
 0x28f   :  { %1080 = vtanh.f32 %v1841_v7  ;;  %v552_v10 = vadd.f32 0.5, %v549_v8  ;;  %2239 = vst [vmem:[#allocation23_spill] sm:$0xff] %v1987_v4  ;;  %v1996_v8 = vld [vmem:[#allocation7 + $0x30] sm:$0xff] }
 0x290   :  { %2240 = vst [vmem:[#allocation25_spill] sm:$0xff] %v1990_v5 }
 0x291   :  { %2241 = vst [vmem:[#allocation26_spill] sm:$0xff] %v1993_v6 }
 0x292   :  { %2242 = vst [vmem:[#allocation32_spill] sm:$0xff] %v1996_v8 }
 0x295   :  { %v1081_v11 = vpop.eup %1080 }
 0x296   :  { %v558_v63 = vmul.f32 %v1081_v11, %v552_v10  ;;  %v1999_v10 = vld [vmem:[#allocation7 + $0x38] sm:$0xff]  ;;  %v2002_v11 = vld [vmem:[#allocation7] sm:$0xff] }
 0x297   :  { %2243 = vst [vmem:[#allocation27_spill] sm:$0xff] %v1999_v10 }
 0x298   :  { %v559_v60 = vpack.c.bf16 %v558_v63, %v558_v63  ;;  %585 = vmatmul.f32.vlgmr.msra.gmra.mxu0 %v558_v63  ;;  %605 = vmatmul.f32.vlgmr.msra.gmra.mxu1 %v558_v63  ;;  %2244 = vst [vmem:[#allocation29_spill] sm:$0xff] %v2002_v11 }
 0x299   :  { %625 = vmatmul.f32.vlgmr.msra.gmra.mxu2 %v558_v63  ;;  %645 = vmatmul.f32.vlgmr.msra.gmra.mxu3 %v558_v63  ;;  %v2005_v63 = vld [vmem:[#allocation7 + $0x8] sm:$0xff] }
 0x29a   :  { %561 = vst [vmem:[#allocation9 + $0xc] sm:$0xf] %v559_v60  ;;  %793 = vmatpush.msra.mxu0 %v1754_v56  ;;  %813 = vmatpush.msra.mxu1 %v1757_v55  ;;  %v2008_v60 = vld [vmem:[#allocation7 + $0x10] sm:$0xff] }
 0x29b   :  { %833 = vmatpush.msra.mxu2 %v1846_v49  ;;  %853 = vmatpush.msra.mxu3 %v1761_v41  ;;  %2245 = vst [vmem:[#allocation30_spill] sm:$0xff] %v2005_v63 }
 0x29c   :  { %794 = vmatpush.msra.mxu0 %v1764_v43  ;;  %814 = vmatpush.msra.mxu1 %v1767_v53  ;;  %2246 = vst [vmem:[#allocation33_spill] sm:$0xff] %v2008_v60 }
 0x29d   :  { %834 = vmatpush.msra.mxu2 %v1852_v51  ;;  %854 = vmatpush.msra.mxu3 %v1771_v58 }
 0x29e   :  { %795 = vmatpush.msra.mxu0 %v1774_v48  ;;  %815 = vmatpush.msra.mxu1 %v1777_v9 }
 0x29f   :  { %835 = vmatpush.msra.mxu2 %v1858_v50  ;;  %855 = vmatpush.msra.mxu3 %v1781_v54 }
 0x2a0   :  { %796 = vmatpush.msra.mxu0 %v1784_v61  ;;  %816 = vmatpush.msra.mxu1 %v1787_v12 }
 0x2a1   :  { %836 = vmatpush.msra.mxu2 %v1864_v47  ;;  %856 = vmatpush.msra.mxu3 %v1867_v45 }
 0x2a2   :  { %797 = vmatpush.msra.mxu0 %v1870_v52  ;;  %817 = vmatpush.msra.mxu1 %v1873_v57 }
 0x2a3   :  { %837 = vmatpush.msra.mxu2 %v1876_v44  ;;  %857 = vmatpush.msra.mxu3 %v1879_v59 }
 0x2a4   :  { %798 = vmatpush.msra.mxu0 %v1882_v62  ;;  %818 = vmatpush.msra.mxu1 %v1885_v13 }
 0x2a5   :  { %838 = vmatpush.msra.mxu2 %v1888_v14  ;;  %858 = vmatpush.msra.mxu3 %v1891_v15 }
 0x2a6   :  { %799 = vmatpush.msra.mxu0 %v1894_v16  ;;  %819 = vmatpush.msra.mxu1 %v1897_v17 }
 0x2a7   :  { %839 = vmatpush.msra.mxu2 %v1900_v18  ;;  %859 = vmatpush.msra.mxu3 %v1903_v19 }
 0x2a8   :  { %800 = vmatpush.msra.mxu0 %v1906_v20  ;;  %820 = vmatpush.msra.mxu1 %v1909_v21 }
 0x2a9   :  { %840 = vmatpush.msra.mxu2 %v1912_v22  ;;  %860 = vmatpush.msra.mxu3 %v1915_v23 }
 0x2aa   :  { %801 = vmatpush.msra.mxu0 %v1918_v24  ;;  %821 = vmatpush.msra.mxu1 %v1921_v25 }
 0x2ab   :  { %841 = vmatpush.msra.mxu2 %v1924_v26  ;;  %861 = vmatpush.msra.mxu3 %v1927_v27 }
 0x2ac   :  { %802 = vmatpush.msra.mxu0 %v1930_v28  ;;  %822 = vmatpush.msra.mxu1 %v1933_v29 }
 0x2ad   :  { %842 = vmatpush.msra.mxu2 %v1936_v30  ;;  %862 = vmatpush.msra.mxu3 %v1939_v31 }
 0x2ae   :  { %803 = vmatpush.msra.mxu0 %v1942_v32  ;;  %823 = vmatpush.msra.mxu1 %v1945_v33 }
 0x2af   :  { %843 = vmatpush.msra.mxu2 %v1948_v34  ;;  %863 = vmatpush.msra.mxu3 %v1951_v35 }
 0x2b0   :  { %804 = vmatpush.msra.mxu0 %v1954_v36  ;;  %824 = vmatpush.msra.mxu1 %v1957_v37 }
 0x2b1   :  { %844 = vmatpush.msra.mxu2 %v1960_v38  ;;  %864 = vmatpush.msra.mxu3 %v1963_v39 }
 0x2b2   :  { %805 = vmatpush.msra.mxu0 %v1966_v40  ;;  %825 = vmatpush.msra.mxu1 %v1969_v42 }
 0x2b3   :  { %845 = vmatpush.msra.mxu2 %v1972_v46  ;;  %865 = vmatpush.msra.mxu3 %v1975_v0 }
 0x2b4   :  { %806 = vmatpush.msra.mxu0 %v1978_v1  ;;  %826 = vmatpush.msra.mxu1 %v1981_v2 }
 0x2b5   :  { %846 = vmatpush.msra.mxu2 %v1984_v3  ;;  %866 = vmatpush.msra.mxu3 %v1987_v4 }
 0x2b6   :  { %807 = vmatpush.msra.mxu0 %v1990_v5  ;;  %827 = vmatpush.msra.mxu1 %v1993_v6  ;;  %v2011_v6 = vld [vmem:[#allocation7 + $0x18] sm:$0xff] }
 0x2b7   :  { %847 = vmatpush.msra.mxu2 %v1996_v8  ;;  %867 = vmatpush.msra.mxu3 %v1999_v10  ;;  %2247 = vst [vmem:[#allocation31_spill] sm:$0xff] %v2011_v6  ;;  %v563_v8 = vld [vmem:[#allocation4 + $0x40] sm:$0xff] }
 0x2b8   :  { %808 = vmatpush.msra.mxu0 %v2002_v11  ;;  %828 = vmatpush.msra.mxu1 %v2005_v63  ;;  %v565_v5 = vunpack.c.l.bf16 %v563_v8  ;;  %v566_v4 = vunpack.c.h.bf16 %v563_v8  ;;  %v564_v11 = vld [vmem:[#allocation4 + $0x48] sm:$0xff] }
 0x2b9   :  { %848 = vmatpush.msra.mxu2 %v2008_v60  ;;  %868 = vmatpush.msra.mxu3 %v2011_v6  ;;  %v567_v42 = vunpack.c.l.bf16 %v564_v11  ;;  %v568_v63 = vunpack.c.h.bf16 %v564_v11 }
 0x315   :  { %v586_v10 = vpop.f32.mrf.mxu0  ;;  %v606_v3 = vpop.f32.mrf.mxu1 }
 0x316   :  { %v649_v2 = vadd.f32 %v586_v10, %v565_v5  ;;  %v650_v1 = vadd.f32 %v606_v3, %v566_v4 }
 0x318   :  { %v653_v0 = vmul.f32 0.5, %v649_v2  ;;  %v654_v46 = vmul.f32 0.5, %v650_v1 }
 0x31a   :  { %1082 = vtanh.f32 %v653_v0 }
 0x31b   :  { %1084 = vtanh.f32 %v654_v46 }
 0x31c   :  { %v626_v40 = vpop.f32.mrf.mxu2  ;;  %v646_v60 = vpop.f32.mrf.mxu3 }
 0x31d   :  { %v651_v39 = vadd.f32 %v626_v40, %v567_v42  ;;  %v652_v38 = vadd.f32 %v646_v60, %v568_v63 }
 0x31f   :  { %v655_v37 = vmul.f32 0.5, %v651_v39  ;;  %1086 = vtanh.f32 %v652_v38 }
 0x320   :  { %v1083_v6 = vpop.eup %1082 }
 0x321   :  { %v1085_v36 = vpop.eup %1084  ;;  %v659_v8 = vmul.f32 0.5, %v1083_v6  ;;  %1088 = vtanh.f32 %v655_v37 }
 0x322   :  { %v660_v35 = vmul.f32 0.5, %v1085_v36 }
 0x323   :  { %v662_v5 = vadd.f32 0.5, %v659_v8 }
 0x324   :  { %v663_v3 = vadd.f32 0.5, %v660_v35 }
 0x325   :  { %v1087_v4 = vpop.eup %1086 }
 0x326   :  { %v666_v1 = vmul.f32 %v663_v3, %v1841_v7  ;;  %v667_v2 = vmul.f32 %v1087_v4, %v662_v5  ;;  %v2259_v7 = vld [vmem:[#allocation28_spill] sm:$0xff]  ;;  %v787_v4 = vld [vmem:[#allocation4 + $0x60] sm:$0xff] }
 0x327   :  { %v1089_v10 = vpop.eup %1088 }
 0x328   :  { %v2015_v0 = vadd.f32 %v667_v2, %v666_v1  ;;  %v661_v40 = vmul.f32 0.5, %v1089_v10  ;;  %v789_v1 = vunpack.c.l.bf16 %v787_v4  ;;  %v790_v2 = vunpack.c.h.bf16 %v787_v4 }
 0x32a   :  { %1090 = vtanh.f32 %v2015_v0  ;;  %v664_v42 = vadd.f32 0.5, %v661_v40 }
 0x330   :  { %v1091_v39 = vpop.eup %1090 }
 0x331   :  { %v670_v38 = vmul.f32 %v1091_v39, %v664_v42  ;;  %v788_v39 = vld [vmem:[#allocation4 + $0x68] sm:$0xff] }
 0x333   :  { %v671_v46 = vpack.c.bf16 %v670_v38, %v670_v38  ;;  %697 = vmatmul.f32.vlgmr.msrb.gmra.mxu0 %v670_v38  ;;  %717 = vmatmul.f32.vlgmr.msrb.gmra.mxu1 %v670_v38 }
 0x334   :  { %737 = vmatmul.f32.vlgmr.msrb.gmra.mxu2 %v670_v38  ;;  %757 = vmatmul.f32.vlgmr.msrb.gmra.mxu3 %v670_v38 }
 0x335   :  { %673 = vst [vmem:[#allocation9 + $0x10] sm:$0xf] %v671_v46  ;;  %905 = vmatpush.msrb.mxu0 %v1754_v56  ;;  %925 = vmatpush.msrb.mxu1 %v1757_v55  ;;  %v2248_v56 = vld [vmem:[#allocation13_spill] sm:$0xff]  ;;  %v2249_v55 = vld [vmem:[#allocation14_spill] sm:$0xff] }
 0x336   :  { %945 = vmatpush.msrb.mxu2 %v1846_v49  ;;  %965 = vmatpush.msrb.mxu3 %v1761_v41  ;;  %v2250_v41 = vld [vmem:[#allocation15_spill] sm:$0xff] }
 0x337   :  { %906 = vmatpush.msrb.mxu0 %v1764_v43  ;;  %926 = vmatpush.msrb.mxu1 %v1767_v53  ;;  %v2251_v43 = vld [vmem:[#allocation20_spill] sm:$0xff]  ;;  %v2260_v49 = vld [vmem:[#allocation23_spill] sm:$0xff] }
 0x338   :  { %946 = vmatpush.msrb.mxu2 %v1852_v51  ;;  %966 = vmatpush.msrb.mxu3 %v1771_v58  ;;  %v2252_v53 = vld [vmem:[#allocation16_spill] sm:$0xff]  ;;  %v2253_v58 = vld [vmem:[#allocation17_spill] sm:$0xff] }
 0x339   :  { %907 = vmatpush.msrb.mxu0 %v1774_v48  ;;  %927 = vmatpush.msrb.mxu1 %v1777_v9  ;;  %v2254_v48 = vld [vmem:[#allocation18_spill] sm:$0xff]  ;;  %v2255_v9 = vld [vmem:[#allocation24_spill] sm:$0xff]  ;;  %v2261_v51 = vld [vmem:[#allocation25_spill] sm:$0xff] }
 0x33a   :  { %947 = vmatpush.msrb.mxu2 %v1858_v50  ;;  %967 = vmatpush.msrb.mxu3 %v1781_v54  ;;  %v2256_v54 = vld [vmem:[#allocation19_spill] sm:$0xff]  ;;  %v2262_v50 = vld [vmem:[#allocation26_spill] sm:$0xff] }
 0x33b   :  { %908 = vmatpush.msrb.mxu0 %v1784_v61  ;;  %928 = vmatpush.msrb.mxu1 %v1787_v12  ;;  %v2257_v61 = vld [vmem:[#allocation21_spill] sm:$0xff]  ;;  %v2258_v12 = vld [vmem:[#allocation22_spill] sm:$0xff] }
 0x33c   :  { %948 = vmatpush.msrb.mxu2 %v1864_v47  ;;  %968 = vmatpush.msrb.mxu3 %v1867_v45  ;;  %v2263_v47 = vld [vmem:[#allocation32_spill] sm:$0xff]  ;;  %v2264_v45 = vld [vmem:[#allocation27_spill] sm:$0xff] }
 0x33d   :  { %909 = vmatpush.msrb.mxu0 %v1870_v52  ;;  %929 = vmatpush.msrb.mxu1 %v1873_v57  ;;  %v2265_v52 = vld [vmem:[#allocation29_spill] sm:$0xff]  ;;  %v2266_v57 = vld [vmem:[#allocation30_spill] sm:$0xff] }
 0x33e   :  { %949 = vmatpush.msrb.mxu2 %v1876_v44  ;;  %969 = vmatpush.msrb.mxu3 %v1879_v59  ;;  %v2267_v44 = vld [vmem:[#allocation33_spill] sm:$0xff]  ;;  %v2268_v59 = vld [vmem:[#allocation31_spill] sm:$0xff] }
 0x33f   :  { %910 = vmatpush.msrb.mxu0 %v1882_v62  ;;  %930 = vmatpush.msrb.mxu1 %v1885_v13  ;;  %v675_v62 = vld [vmem:[#allocation4 + $0x50] sm:$0xff] }
 0x340   :  { %950 = vmatpush.msrb.mxu2 %v1888_v14  ;;  %970 = vmatpush.msrb.mxu3 %v1891_v15  ;;  %v677_v13 = vunpack.c.l.bf16 %v675_v62  ;;  %v678_v14 = vunpack.c.h.bf16 %v675_v62 }
 0x341   :  { %911 = vmatpush.msrb.mxu0 %v1894_v16  ;;  %931 = vmatpush.msrb.mxu1 %v1897_v17 }
 0x342   :  { %951 = vmatpush.msrb.mxu2 %v1900_v18  ;;  %971 = vmatpush.msrb.mxu3 %v1903_v19  ;;  %v676_v19 = vld [vmem:[#allocation4 + $0x58] sm:$0xff] }
 0x343   :  { %912 = vmatpush.msrb.mxu0 %v1906_v20  ;;  %932 = vmatpush.msrb.mxu1 %v1909_v21 }
 0x344   :  { %952 = vmatpush.msrb.mxu2 %v1912_v22  ;;  %972 = vmatpush.msrb.mxu3 %v1915_v23  ;;  %v679_v22 = vunpack.c.l.bf16 %v676_v19  ;;  %v680_v23 = vunpack.c.h.bf16 %v676_v19 }
 0x345   :  { %913 = vmatpush.msrb.mxu0 %v1918_v24  ;;  %933 = vmatpush.msrb.mxu1 %v1921_v25 }
 0x346   :  { %953 = vmatpush.msrb.mxu2 %v1924_v26  ;;  %973 = vmatpush.msrb.mxu3 %v1927_v27 }
 0x347   :  { %914 = vmatpush.msrb.mxu0 %v1930_v28  ;;  %934 = vmatpush.msrb.mxu1 %v1933_v29 }
 0x348   :  { %954 = vmatpush.msrb.mxu2 %v1936_v30  ;;  %974 = vmatpush.msrb.mxu3 %v1939_v31 }
 0x349   :  { %915 = vmatpush.msrb.mxu0 %v1942_v32  ;;  %935 = vmatpush.msrb.mxu1 %v1945_v33 }
 0x34a   :  { %955 = vmatpush.msrb.mxu2 %v1948_v34  ;;  %975 = vmatpush.msrb.mxu3 %v2248_v56  ;;  %v791_v56 = vunpack.c.l.bf16 %v788_v39 }
 0x34b   :  { %916 = vmatpush.msrb.mxu0 %v2249_v55  ;;  %936 = vmatpush.msrb.mxu1 %v2250_v41  ;;  %v792_v55 = vunpack.c.h.bf16 %v788_v39 }
 0x34c   :  { %956 = vmatpush.msrb.mxu2 %v2251_v43  ;;  %976 = vmatpush.msrb.mxu3 %v2252_v53 }
 0x34d   :  { %917 = vmatpush.msrb.mxu0 %v2253_v58  ;;  %937 = vmatpush.msrb.mxu1 %v2254_v48 }
 0x34e   :  { %957 = vmatpush.msrb.mxu2 %v2255_v9  ;;  %977 = vmatpush.msrb.mxu3 %v2256_v54 }
 0x34f   :  { %918 = vmatpush.msrb.mxu0 %v2257_v61  ;;  %938 = vmatpush.msrb.mxu1 %v2258_v12 }
 0x350   :  { %958 = vmatpush.msrb.mxu2 %v2259_v7  ;;  %978 = vmatpush.msrb.mxu3 %v2260_v49 }
 0x351   :  { %919 = vmatpush.msrb.mxu0 %v2261_v51  ;;  %939 = vmatpush.msrb.mxu1 %v2262_v50 }
 0x352   :  { %959 = vmatpush.msrb.mxu2 %v2263_v47  ;;  %979 = vmatpush.msrb.mxu3 %v2264_v45 }
 0x353   :  { %920 = vmatpush.msrb.mxu0 %v2265_v52  ;;  %940 = vmatpush.msrb.mxu1 %v2266_v57 }
 0x354   :  { %960 = vmatpush.msrb.mxu2 %v2267_v44  ;;  %980 = vmatpush.msrb.mxu3 %v2268_v59 }
 0x3b0   :  { %v698_v15 = vpop.f32.mrf.mxu0  ;;  %v718_v16 = vpop.f32.mrf.mxu1 }
 0x3b1   :  { %v761_v17 = vadd.f32 %v698_v15, %v677_v13  ;;  %v762_v18 = vadd.f32 %v718_v16, %v678_v14  ;;  %v899_v14 = vld [vmem:[#allocation4 + $0x70] sm:$0xff] }
 0x3b2   :  { %v901_v15 = vunpack.c.l.bf16 %v899_v14  ;;  %v902_v16 = vunpack.c.h.bf16 %v899_v14 }
 0x3b3   :  { %v765_v20 = vmul.f32 0.5, %v761_v17  ;;  %v766_v21 = vmul.f32 0.5, %v762_v18 }
 0x3b5   :  { %1092 = vtanh.f32 %v765_v20 }
 0x3b6   :  { %1094 = vtanh.f32 %v766_v21  ;;  %v900_v21 = vld [vmem:[#allocation4 + $0x78] sm:$0xff] }
 0x3b7   :  { %v738_v24 = vpop.f32.mrf.mxu2  ;;  %v758_v25 = vpop.f32.mrf.mxu3 }
 0x3b8   :  { %v763_v26 = vadd.f32 %v738_v24, %v679_v22  ;;  %v764_v27 = vadd.f32 %v758_v25, %v680_v23  ;;  %v903_v24 = vunpack.c.l.bf16 %v900_v21  ;;  %v904_v25 = vunpack.c.h.bf16 %v900_v21 }
 0x3ba   :  { %v767_v28 = vmul.f32 0.5, %v763_v26  ;;  %1096 = vtanh.f32 %v764_v27 }
 0x3bb   :  { %v1093_v29 = vpop.eup %1092 }
 0x3bc   :  { %v1095_v30 = vpop.eup %1094  ;;  %v771_v31 = vmul.f32 0.5, %v1093_v29  ;;  %1098 = vtanh.f32 %v767_v28 }
 0x3bd   :  { %v772_v32 = vmul.f32 0.5, %v1095_v30 }
 0x3be   :  { %v774_v33 = vadd.f32 0.5, %v771_v31 }
 0x3bf   :  { %v775_v34 = vadd.f32 0.5, %v772_v32 }
 0x3c0   :  { %v1097_v35 = vpop.eup %1096 }
 0x3c1   :  { %v778_v36 = vmul.f32 %v775_v34, %v2015_v0  ;;  %v779_v37 = vmul.f32 %v1097_v35, %v774_v33 }
 0x3c2   :  { %v1099_v6 = vpop.eup %1098 }
 0x3c3   :  { %v780_v11 = vadd.f32 %v779_v37, %v778_v36  ;;  %v773_v63 = vmul.f32 0.5, %v1099_v6 }
 0x3c5   :  { %1100 = vtanh.f32 %v780_v11  ;;  %v776_v60 = vadd.f32 0.5, %v773_v63 }
 0x3cb   :  { %v1101_v8 = vpop.eup %1100 }
 0x3cc   :  { %v782_v5 = vmul.f32 %v1101_v8, %v776_v60 }
 0x3ce   :  { %v783_v3 = vpack.c.bf16 %v782_v5, %v782_v5  ;;  %809 = vmatmul.f32.vlgmr.msra.gmra.mxu0 %v782_v5  ;;  %829 = vmatmul.f32.vlgmr.msra.gmra.mxu1 %v782_v5 }
 0x3cf   :  { %849 = vmatmul.f32.vlgmr.msra.gmra.mxu2 %v782_v5  ;;  %869 = vmatmul.f32.vlgmr.msra.gmra.mxu3 %v782_v5 }
 0x3d0   :  { %785 = vst [vmem:[#allocation9 + $0x14] sm:$0xf] %v783_v3 }
 0x44b   :  { %v810_v10 = vpop.f32.mrf.mxu0  ;;  %v830_v40 = vpop.f32.mrf.mxu1 }
 0x44c   :  { %v873_v0 = vadd.f32 %v810_v10, %v789_v1  ;;  %v874_v42 = vadd.f32 %v830_v40, %v790_v2 }
 0x44e   :  { %v877_v38 = vmul.f32 0.5, %v873_v0  ;;  %v878_v46 = vmul.f32 0.5, %v874_v42 }
 0x450   :  { %1102 = vtanh.f32 %v877_v38 }
 0x451   :  { %1104 = vtanh.f32 %v878_v46 }
 0x452   :  { %v850_v41 = vpop.f32.mrf.mxu2  ;;  %v870_v43 = vpop.f32.mrf.mxu3 }
 0x453   :  { %v875_v53 = vadd.f32 %v850_v41, %v791_v56  ;;  %v876_v58 = vadd.f32 %v870_v43, %v792_v55 }
 0x455   :  { %v879_v48 = vmul.f32 0.5, %v875_v53  ;;  %1106 = vtanh.f32 %v876_v58 }
 0x456   :  { %v1103_v9 = vpop.eup %1102 }
 0x457   :  { %v1105_v54 = vpop.eup %1104  ;;  %v883_v61 = vmul.f32 0.5, %v1103_v9  ;;  %1108 = vtanh.f32 %v879_v48 }
 0x458   :  { %v884_v12 = vmul.f32 0.5, %v1105_v54 }
 0x459   :  { %v886_v7 = vadd.f32 0.5, %v883_v61 }
 0x45a   :  { %v887_v49 = vadd.f32 0.5, %v884_v12 }
 0x45b   :  { %v1107_v51 = vpop.eup %1106 }
 0x45c   :  { %v890_v50 = vmul.f32 %v887_v49, %v780_v11  ;;  %v891_v47 = vmul.f32 %v1107_v51, %v886_v7 }
 0x45d   :  { %v1109_v45 = vpop.eup %1108 }
 0x45e   :  { %v892_v52 = vadd.f32 %v891_v47, %v890_v50  ;;  %v885_v57 = vmul.f32 0.5, %v1109_v45 }
 0x460   :  { %1110 = vtanh.f32 %v892_v52  ;;  %v888_v44 = vadd.f32 0.5, %v885_v57 }
 0x466   :  { %v1111_v59 = vpop.eup %1110 }
 0x467   :  { %v894_v62 = vmul.f32 %v1111_v59, %v888_v44 }
 0x469   :  { %v895_v13 = vpack.c.bf16 %v894_v62, %v894_v62  ;;  %921 = vmatmul.f32.vlgmr.msrb.gmra.mxu0 %v894_v62  ;;  %941 = vmatmul.f32.vlgmr.msrb.gmra.mxu1 %v894_v62 }
 0x46a   :  { %961 = vmatmul.f32.vlgmr.msrb.gmra.mxu2 %v894_v62  ;;  %981 = vmatmul.f32.vlgmr.msrb.gmra.mxu3 %v894_v62 }
 0x46b   :  { %897 = vst [vmem:[#allocation9 + $0x18] sm:$0xf] %v895_v13 }
 0x4e6   :  { %v922_v17 = vpop.f32.mrf.mxu0  ;;  %v942_v18 = vpop.f32.mrf.mxu1 }
 0x4e7   :  { %v985_v19 = vadd.f32 %v922_v17, %v901_v15  ;;  %v986_v20 = vadd.f32 %v942_v18, %v902_v16 }
 0x4e9   :  { %v989_v22 = vmul.f32 0.5, %v985_v19  ;;  %v990_v23 = vmul.f32 0.5, %v986_v20 }
 0x4eb   :  { %1112 = vtanh.f32 %v989_v22 }
 0x4ec   :  { %1114 = vtanh.f32 %v990_v23 }
 0x4ed   :  { %v962_v26 = vpop.f32.mrf.mxu2  ;;  %v982_v27 = vpop.f32.mrf.mxu3 }
 0x4ee   :  { %v987_v28 = vadd.f32 %v962_v26, %v903_v24  ;;  %v988_v29 = vadd.f32 %v982_v27, %v904_v25 }
 0x4f0   :  { %v991_v30 = vmul.f32 0.5, %v987_v28  ;;  %1116 = vtanh.f32 %v988_v29 }
 0x4f1   :  { %v1113_v31 = vpop.eup %1112 }
 0x4f2   :  { %v1115_v32 = vpop.eup %1114  ;;  %v995_v33 = vmul.f32 0.5, %v1113_v31  ;;  %1118 = vtanh.f32 %v991_v30 }
 0x4f3   :  { %v996_v34 = vmul.f32 0.5, %v1115_v32 }
 0x4f4   :  { %v998_v35 = vadd.f32 0.5, %v995_v33 }
 0x4f5   :  { %v999_v36 = vadd.f32 0.5, %v996_v34 }
 0x4f6   :  { %v1117_v37 = vpop.eup %1116 }
 0x4f7   :  { %v1002_v6 = vmul.f32 %v999_v36, %v892_v52  ;;  %v1003_v11 = vmul.f32 %v1117_v37, %v998_v35 }
 0x4f8   :  { %v1119_v63 = vpop.eup %1118 }
 0x4f9   :  { %v1004_v60 = vadd.f32 %v1003_v11, %v1002_v6  ;;  %v997_v8 = vmul.f32 0.5, %v1119_v63 }
 0x4fb   :  { %1120 = vtanh.f32 %v1004_v60  ;;  %v1000_v5 = vadd.f32 0.5, %v997_v8 }
 0x501   :  { %v1121_v3 = vpop.eup %1120 }
 0x502   :  { %v1006_v4 = vmul.f32 %v1121_v3, %v1000_v5 }
 0x504   :  { %v1007_v1 = vpack.c.bf16 %v1006_v4, %v1006_v4 }
 0x506   :  { %1009 = vst [vmem:[#allocation9 + $0x1c] sm:$0xf] %v1007_v1 }
 0x507   :  { %1024 = dma.vmem_to_hbm [thread:$0]  %s1017_s1, 512, %s1019_s25, [#allocation6], %s1272_s26, %s1272_s26, %s1273_s27  }
 0x508   :  { %1262 = dma.done.wait [#allocation6], 512  }
 0x509   :  { %1263 = vsyncadd [#allocation6], 4294966784 }
 0x50a   :  { %1029 = vsyncpa [#allocation5], 1 }
 0x50b   :  { %1030 = vsyncpa [#allocation8], 1 }
 0x50c   :  { %1031 = vsyncpa [#allocation6], 1 }

</bundles_post_ra>
